<compile_context>
chip_gen: v6e
topology: v6e:2x2x1
jax: 0.10.0
libtpu: 0.0.40
codegen_flags: <defaults>
</compile_context>

<pallas_src>
import functools

import jax
import jax.numpy as jnp
from jax import lax
from jax.experimental import pallas as pl
from jax.experimental.pallas import tpu as pltpu

EPS = 1e-5


def _round_up(v, m):
    return ((v + m - 1) // m) * m


def _detect_vmem_limit():
    cap = 64 * 1024 * 1024            # conservative fallback = v7x per-TC VMEM
    try:
        cap = int(pltpu.get_tpu_info().vmem_capacity_bytes)
    except Exception:
        pass
    # leave ~25% headroom; 96 MiB ceiling (v5e/v6e: 128 MiB phys, v7x: 64 MiB)
    return int(min(96 * 1024 * 1024, cap * 3 // 4))


_VMEM_LIMIT = _detect_vmem_limit()


def _pick_tco(cpo, cpi, H, W):
    """Largest lane-dense Cout tile whose pass-1 working set fits comfortably."""
    Hp, Wp = H + 2, W + 2
    for t in (512, 256, 128):
        if cpo % t:
            continue
        work = (2 * Hp * Wp * cpi * 2            # double-buffered x block (bf16)
                + 2 * 3 * (3 * cpi) * t * 2      # double-buffered weight block
                + 2 * H * W * t * 2              # double-buffered y block
                + 2 * Hp * W * (3 * cpi) * 2     # K-stacked x temporaries
                + H * W * t * 4)                 # f32 accumulator
        if work <= 0.6 * _VMEM_LIMIT:
            return t
    return 128


# --------------------------------------------------------------------------
# Pass 1: 3x3 conv (pad=1) as 3 K-stacked MXU matmuls per (image, Cout-tile)
#         grid step, f32 accumulation, plus per-image per-channel sum and
#         sum-of-squares partials for BatchNorm.  grid = (Cout_tiles, N),
#         both axes "parallel" (no revisited outputs).
# --------------------------------------------------------------------------
def conv_stats_kernel(x_ref, w_ref, y_ref, sum_ref, sq_ref, *, H, W):
    # x_ref  : (1, H+2, W+2, Cpi)  bf16  spatially pre-padded activation
    # w_ref  : (3, 3*Cpi, TCO)     bf16  dy-major, dx taps stacked along K
    # y_ref  : (1, H*W, TCO)       bf16  conv output (pre-BN), flat spatial
    # sum_ref: (1, 1, TCO)         f32   per-image sum_y    (partial stats)
    # sq_ref : (1, 1, TCO)         f32   per-image sum_y^2  (partial stats)
    x = x_ref[0]                                  # (H+2, W+2, Cpi)
    cin_p = x.shape[-1]
    tco = w_ref.shape[-1]

    # K-stack the 3 dx taps along channels (<=3 sublane-shift copies), then
    # flatten (H+2, W) rows once; the dy taps become cheap row-block slices
    # (aligned when W % 8 == 0).
    xcat = jnp.concatenate([x[:, dx:dx + W, :] for dx in range(3)], axis=-1)
    x2d = xcat.reshape((H + 2) * W, 3 * cin_p)

    acc = jnp.zeros((H * W, tco), jnp.float32)
    for dy in range(3):                           # 3 MXU matmuls, K = 3*Cpi
        acc = acc + jnp.dot(x2d[dy * W:dy * W + H * W, :], w_ref[dy],
                            preferred_element_type=jnp.float32)

    y_ref[0] = acc.astype(y_ref.dtype)
    sum_ref[...] = jnp.sum(acc, axis=0, keepdims=True).reshape(1, 1, tco)
    sq_ref[...] = jnp.sum(acc * acc, axis=0, keepdims=True).reshape(1, 1, tco)


# --------------------------------------------------------------------------
# Pass 2: y * scale + shift, ReLU, cast to bf16 and write into a spatially
#         pre-padded (H+2, W+2) buffer so the next conv needs no host-side
#         pad / cast / slice.  Purely elementwise, fully parallel grid.
# --------------------------------------------------------------------------
def bn_relu_pad_kernel(y_ref, scale_ref, shift_ref, o_ref, *, H, W):
    # y_ref    : (1, H*W, TCO)       bf16
    # scale_ref: (1, TCO)            f32    gamma / sqrt(var + eps)
    # shift_ref: (1, TCO)            f32    beta - mean * scale
    # o_ref    : (1, H+2, W+2, TCO)  bf16   zero border, interior = ReLU(BN(y))
    y = y_ref[0].astype(jnp.float32)                            # (H*W, TCO)
    val = jnp.maximum(y * scale_ref[...] + shift_ref[...], 0.0)
    tco = o_ref.shape[-1]
    o_ref[...] = jnp.zeros_like(o_ref)                          # zero border
    o_ref[0, 1:H + 1, 1:W + 1, :] = val.reshape(H, W, tco).astype(o_ref.dtype)


def conv_block(xp, w_oihw, gamma, beta, *, H, W):
    """One ConvBlock on a spatially pre-padded, channel-padded bf16 activation.

    xp: (N, H+2, W+2, Cpi) bf16 with zero spatial border and zero padded
    channels.  Returns the next block's input in the same padded bf16 layout
    (N, H+2, W+2, Cpo_pad)."""
    N, Hp, Wp, Cpi = xp.shape
    Cout, Cin = w_oihw.shape[0], w_oihw.shape[1]
    HW = H * W
    Cpo = _round_up(max(Cout, 128), 128)
    TCO = _pick_tco(Cpo, Cpi, H, W)
    n_j = Cpo // TCO

    # dy-major weights with the 3 dx taps stacked along K: (3, 3*Cpi, Cpo).
    wt = jnp.transpose(w_oihw, (2, 3, 1, 0))                    # (3,3,Cin,Cout)
    wt = jnp.pad(wt, ((0, 0), (0, 0), (0, Cpi - Cin), (0, Cpo - Cout)))
    wt = wt.reshape(3, 3 * Cpi, Cpo).astype(jnp.bfloat16)

    flops = 2 * N * HW * 9 * Cpi * Cpo
    bytes_accessed = (N * Hp * Wp * Cpi * 2) * n_j + wt.size * 2 \
        + N * HW * Cpo * 2 + 2 * N * Cpo * 4

    k1 = functools.partial(conv_stats_kernel, H=H, W=W)
    y, psum, psq = pl.pallas_call(
        k1,
        grid=(n_j, N),
        in_specs=[
            pl.BlockSpec((1, Hp, Wp, Cpi), lambda j, n: (n, 0, 0, 0)),
            pl.BlockSpec((3, 3 * Cpi, TCO), lambda j, n: (0, 0, j)),
        ],
        out_specs=(
            pl.BlockSpec((1, HW, TCO), lambda j, n: (n, 0, j)),
            pl.BlockSpec((1, 1, TCO), lambda j, n: (n, 0, j)),
            pl.BlockSpec((1, 1, TCO), lambda j, n: (n, 0, j)),
        ),
        out_shape=(
            jax.ShapeDtypeStruct((N, HW, Cpo), jnp.bfloat16),
            jax.ShapeDtypeStruct((N, 1, Cpo), jnp.float32),
            jax.ShapeDtypeStruct((N, 1, Cpo), jnp.float32),
        ),
        compiler_params=pltpu.CompilerParams(
            dimension_semantics=("parallel", "parallel"),
            vmem_limit_bytes=_VMEM_LIMIT),
        cost_estimate=pl.CostEstimate(flops=flops, transcendentals=0,
                                      bytes_accessed=bytes_accessed),
    )(xp, wt)

    # Fold batch statistics + BN affine into per-channel scale/shift
    # (tiny (1, Cpo) f32 arrays, plain XLA).
    m = jnp.float32(N * HW)
    mean = jnp.sum(psum, axis=0) / m                            # (1, Cpo)
    var = jnp.maximum(jnp.sum(psq, axis=0) / m - mean * mean, 0.0)
    gamma_p = jnp.pad(gamma, (0, Cpo - Cout)).astype(jnp.float32).reshape(1, Cpo)
    beta_p = jnp.pad(beta, (0, Cpo - Cout)).astype(jnp.float32).reshape(1, Cpo)
    scale = gamma_p * lax.rsqrt(var + EPS)
    shift = beta_p - mean * scale

    k2 = functools.partial(bn_relu_pad_kernel, H=H, W=W)
    out = pl.pallas_call(
        k2,
        grid=(n_j, N),
        in_specs=[
            pl.BlockSpec((1, HW, TCO), lambda j, n: (n, 0, j)),
            pl.BlockSpec((1, TCO), lambda j, n: (0, j)),
            pl.BlockSpec((1, TCO), lambda j, n: (0, j)),
        ],
        out_specs=pl.BlockSpec((1, Hp, Wp, TCO), lambda j, n: (n, 0, 0, j)),
        out_shape=jax.ShapeDtypeStruct((N, Hp, Wp, Cpo), jnp.bfloat16),
        compiler_params=pltpu.CompilerParams(
            dimension_semantics=("parallel", "parallel"),
            vmem_limit_bytes=_VMEM_LIMIT),
    )(y, scale, shift)
    return out


def bridge_forward(x_nchw, params):
    """Bridge.forward: two ConvBlocks.  Input/output NCHW f32 like PyTorch."""
    N, Cin, H, W = x_nchw.shape
    Cout_final = params[-1][0].shape[0]
    Cpi0 = _round_up(max(Cin, 128), 128)

    # One-time host prep: NCHW -> NHWC, conv zero border, channel pad, bf16.
    # The padded bf16 layout is then kept alive across the whole Bridge.
    x = jnp.transpose(x_nchw, (0, 2, 3, 1))
    x = jnp.pad(x, ((0, 0), (1, 1), (1, 1), (0, Cpi0 - Cin))).astype(jnp.bfloat16)

    for (w, _b, g, be) in params:
        # Conv bias `_b` is intentionally dropped: under train-mode BatchNorm
        # a per-channel bias cancels exactly through the mean subtraction.
        x = conv_block(x, w, g, be, H=H, W=W)

    # Un-pad once at the very end (interior spatial window + real channels).
    out = x[:, 1:H + 1, 1:W + 1, :Cout_final].astype(jnp.float32)
    return jnp.transpose(out, (0, 3, 1, 2))


# ---------------- plain-JAX reference (mirrors the bf16 operand choices) ----
def _convblock_ref(x_nchw, w, b, g, be):
    y = lax.conv_general_dilated(
        x_nchw.astype(jnp.bfloat16), w.astype(jnp.bfloat16),
        window_strides=(1, 1), padding=((1, 1), (1, 1)),
        dimension_numbers=("NCHW", "OIHW", "NCHW"),
        preferred_element_type=jnp.float32)
    y = y + b[None, :, None, None]
    mean = jnp.mean(y, axis=(0, 2, 3), keepdims=True)
    var = jnp.mean((y - mean) ** 2, axis=(0, 2, 3), keepdims=True)
    y = y.astype(jnp.bfloat16).astype(jnp.float32)   # mirror kernel's bf16 y
    y = (y - mean) * lax.rsqrt(var + EPS)
    y = y * g[None, :, None, None] + be[None, :, None, None]
    return jnp.maximum(y, 0.0)


def _bridge_ref(x_nchw, params):
    x = x_nchw
    for (w, b, g, be) in params:
        x = _convblock_ref(x, w, b, g, be)
    return x


def _init_params(key, in_channels, out_channels):
    """Deterministic synthetic parameters with the shapes Bridge.__init__ implies."""
    params = []
    cins = [in_channels, out_channels]
    for i, cin in enumerate(cins):
        k = jax.random.fold_in(key, i)
        kw, kb, kg, kbe = jax.random.split(k, 4)
        fan_in = cin * 3 * 3
        w = jax.random.normal(kw, (out_channels, cin, 3, 3), jnp.float32) / jnp.sqrt(fan_in)
        b = 0.1 * jax.random.normal(kb, (out_channels,), jnp.float32)
        gamma = 1.0 + 0.1 * jax.random.normal(kg, (out_channels,), jnp.float32)
        beta = 0.1 * jax.random.normal(kbe, (out_channels,), jnp.float32)
        params.append((w, b, gamma, beta))
    return params


if __name__ == "__main__":
    key = jax.random.PRNGKey(0)
    N, Cin, Cout, H, W = 2, 4, 8, 16, 16

    kx, kp = jax.random.split(key)
    x = jax.random.normal(kx, (N, Cin, H, W), jnp.float32)   # NCHW, like PyTorch
    params = _init_params(kp, Cin, Cout)

    out = jax.block_until_ready(jax.jit(bridge_forward)(x, params))
    ref = jax.block_until_ready(_bridge_ref(x, params))

    assert out.shape == (N, Cout, H, W), out.shape
    max_err = float(jnp.max(jnp.abs(out - ref)))
    assert jnp.allclose(out, ref, atol=3e-2, rtol=3e-2), max_err
    print("KERNEL_OK")
</pallas_src>

<mosaic_0001>
module attributes {stable_mosaic.version = 11 : i64} {
  func.func @bn_relu_pad_kernel(%arg0: i32, %arg1: i32, %arg2: memref<1x256x128xbf16, #tpu.memory_space<vmem>>, %arg3: memref<1x128xf32, #tpu.memory_space<vmem>>, %arg4: memref<1x128xf32, #tpu.memory_space<vmem>>, %arg5: memref<1x18x18x128xbf16, #tpu.memory_space<vmem>>) attributes {dimension_semantics = [#tpu.dimension_semantics<parallel>, #tpu.dimension_semantics<parallel>], iteration_bounds = array<i64: 1, 2>, scalar_prefetch = 0 : i64, scratch_operands = 0 : i64, tpu.core_type = #tpu.core_type<tc>, window_params = [{transform_indices = @transform_0, window_bounds = array<i64: 1, 256, 128>}, {transform_indices = @transform_1, window_bounds = array<i64: 1, 128>}, {transform_indices = @transform_2, window_bounds = array<i64: 1, 128>}, {transform_indices = @transform_3, window_bounds = array<i64: 1, 18, 18, 128>}]} {
    %c0 = arith.constant 0 : index
    %c0_0 = arith.constant 0 : index
    %c0_1 = arith.constant 0 : index
    %0 = vector.load %arg2[%c0, %c0_0, %c0_1] : memref<1x256x128xbf16, #tpu.memory_space<vmem>>, vector<1x256x128xbf16>
    %1 = vector.shape_cast %0 : vector<1x256x128xbf16> to vector<256x128xbf16>
    %2 = arith.extf %1 : vector<256x128xbf16> to vector<256x128xf32>
    %c0_2 = arith.constant 0 : index
    %c0_3 = arith.constant 0 : index
    %3 = vector.load %arg3[%c0_2, %c0_3] : memref<1x128xf32, #tpu.memory_space<vmem>>, vector<1x128xf32>
    %4 = vector.broadcast %3 : vector<1x128xf32> to vector<256x128xf32>
    %5 = arith.mulf %2, %4 : vector<256x128xf32>
    %c0_4 = arith.constant 0 : index
    %c0_5 = arith.constant 0 : index
    %6 = vector.load %arg4[%c0_4, %c0_5] : memref<1x128xf32, #tpu.memory_space<vmem>>, vector<1x128xf32>
    %7 = vector.broadcast %6 : vector<1x128xf32> to vector<256x128xf32>
    %8 = arith.addf %5, %7 : vector<256x128xf32>
    %cst = arith.constant 0.000000e+00 : f32
    %9 = vector.broadcast %cst : f32 to vector<256x128xf32>
    %10 = arith.maximumf %8, %9 : vector<256x128xf32>
    %cst_6 = arith.constant 0.000000e+00 : bf16
    %11 = vector.broadcast %cst_6 : bf16 to vector<1x18x18x128xbf16>
    %c0_7 = arith.constant 0 : index
    %c0_8 = arith.constant 0 : index
    %c0_9 = arith.constant 0 : index
    %c0_10 = arith.constant 0 : index
    %12 = vector.load %arg5[%c0_7, %c0_8, %c0_9, %c0_10] : memref<1x18x18x128xbf16, #tpu.memory_space<vmem>>, vector<1x18x18x128xbf16>
    tpu.vector_store %arg5[%c0_7, %c0_8, %c0_9, %c0_10], %11 {strides = array<i32>} : memref<1x18x18x128xbf16, #tpu.memory_space<vmem>>, vector<1x18x18x128xbf16>,
    %13 = vector.shape_cast %10 : vector<256x128xf32> to vector<16x16x128xf32>
    %14 = arith.truncf %13 : vector<16x16x128xf32> to vector<16x16x128xbf16>
    %c0_11 = arith.constant 0 : index
    %c1 = arith.constant 1 : index
    %c1_12 = arith.constant 1 : index
    %c0_13 = arith.constant 0 : index
    %15 = vector.load %arg5[%c0_11, %c1, %c1_12, %c0_13] : memref<1x18x18x128xbf16, #tpu.memory_space<vmem>>, vector<1x16x16x128xbf16>
    %16 = vector.shape_cast %15 : vector<1x16x16x128xbf16> to vector<16x16x128xbf16>
    %17 = vector.shape_cast %14 : vector<16x16x128xbf16> to vector<1x16x16x128xbf16>
    tpu.vector_store %arg5[%c0_11, %c1, %c1_12, %c0_13], %17 {strides = array<i32>} : memref<1x18x18x128xbf16, #tpu.memory_space<vmem>>, vector<1x16x16x128xbf16>,
    return
  }
  func.func @transform_0(%arg0: i32, %arg1: i32) -> (i32, i32, i32) {
    %c0_i32 = arith.constant 0 : i32
    %c0_i32_0 = arith.constant 0 : i32
    return %arg1, %c0_i32, %arg0 : i32, i32, i32
  }
  func.func @transform_1(%arg0: i32, %arg1: i32) -> (i32, i32) {
    %c0_i32 = arith.constant 0 : i32
    %c0_i32_0 = arith.constant 0 : i32
    return %c0_i32, %arg0 : i32, i32
  }
  func.func @transform_2(%arg0: i32, %arg1: i32) -> (i32, i32) {
    %c0_i32 = arith.constant 0 : i32
    %c0_i32_0 = arith.constant 0 : i32
    return %c0_i32, %arg0 : i32, i32
  }
  func.func @transform_3(%arg0: i32, %arg1: i32) -> (i32, i32, i32, i32) {
    %c0_i32 = arith.constant 0 : i32
    %c0_i32_0 = arith.constant 0 : i32
    %c0_i32_1 = arith.constant 0 : i32
    return %arg1, %c0_i32, %c0_i32_0, %arg0 : i32, i32, i32, i32
  }
}

module attributes {stable_mosaic.version = 11 : i64} {
  func.func @conv_stats_kernel(%arg0: i32, %arg1: i32, %arg2: memref<1x18x18x128xbf16, #tpu.memory_space<vmem>>, %arg3: memref<3x384x128xbf16, #tpu.memory_space<vmem>>, %arg4: memref<1x256x128xbf16, #tpu.memory_space<vmem>>, %arg5: memref<1x1x128xf32, #tpu.memory_space<vmem>>, %arg6: memref<1x1x128xf32, #tpu.memory_space<vmem>>) attributes {dimension_semantics = [#tpu.dimension_semantics<parallel>, #tpu.dimension_semantics<parallel>], iteration_bounds = array<i64: 1, 2>, scalar_prefetch = 0 : i64, scratch_operands = 0 : i64, tpu.core_type = #tpu.core_type<tc>, window_params = [{transform_indices = @transform_0, window_bounds = array<i64: 1, 18, 18, 128>}, {transform_indices = @transform_1, window_bounds = array<i64: 3, 384, 128>}, {transform_indices = @transform_2, window_bounds = array<i64: 1, 256, 128>}, {transform_indices = @transform_3, window_bounds = array<i64: 1, 1, 128>}, {transform_indices = @transform_4, window_bounds = array<i64: 1, 1, 128>}]} {
    %c0 = arith.constant 0 : index
    %c0_0 = arith.constant 0 : index
    %c0_1 = arith.constant 0 : index
    %c0_2 = arith.constant 0 : index
    %0 = vector.load %arg2[%c0, %c0_0, %c0_1, %c0_2] : memref<1x18x18x128xbf16, #tpu.memory_space<vmem>>, vector<1x18x18x128xbf16>
    %1 = vector.shape_cast %0 : vector<1x18x18x128xbf16> to vector<18x18x128xbf16>
    %2 = vector.extract_strided_slice %1 {offsets = [0, 0, 0], sizes = [18, 16, 128], strides = [1, 1, 1]} : vector<18x18x128xbf16> to vector<18x16x128xbf16>
    %3 = vector.extract_strided_slice %1 {offsets = [0, 1, 0], sizes = [18, 16, 128], strides = [1, 1, 1]} : vector<18x18x128xbf16> to vector<18x16x128xbf16>
    %4 = vector.extract_strided_slice %1 {offsets = [0, 2, 0], sizes = [18, 16, 128], strides = [1, 1, 1]} : vector<18x18x128xbf16> to vector<18x16x128xbf16>
    %5 = tpu.concatenate %2, %3, %4 in 2 : vector<18x16x128xbf16>, vector<18x16x128xbf16>, vector<18x16x128xbf16> -> vector<18x16x384xbf16>
    %6 = vector.shape_cast %5 : vector<18x16x384xbf16> to vector<288x384xbf16>
    %cst = arith.constant 0.000000e+00 : f32
    %7 = vector.broadcast %cst : f32 to vector<256x128xf32>
    %8 = vector.extract_strided_slice %6 {offsets = [0, 0], sizes = [256, 384], strides = [1, 1]} : vector<288x384xbf16> to vector<256x384xbf16>
    %c0_3 = arith.constant 0 : index
    %c0_4 = arith.constant 0 : index
    %c0_5 = arith.constant 0 : index
    %9 = vector.load %arg3[%c0_3, %c0_4, %c0_5] : memref<3x384x128xbf16, #tpu.memory_space<vmem>>, vector<1x384x128xbf16>
    %10 = vector.shape_cast %9 : vector<1x384x128xbf16> to vector<384x128xbf16>
    %cst_6 = arith.constant dense<0.000000e+00> : vector<256x128xf32>
    %11 = tpu.matmul %8, %10, %cst_6 {dimension_numbers = #tpu.dot_dimension_numbers<[1], [0], [0], [1], [0, 0, 1, 1], [], []>} : vector<256x384xbf16>, vector<384x128xbf16>, vector<256x128xf32> -> vector<256x128xf32>
    %12 = arith.addf %7, %11 : vector<256x128xf32>
    %13 = vector.extract_strided_slice %6 {offsets = [16, 0], sizes = [256, 384], strides = [1, 1]} : vector<288x384xbf16> to vector<256x384xbf16>
    %c1 = arith.constant 1 : index
    %c0_7 = arith.constant 0 : index
    %c0_8 = arith.constant 0 : index
    %14 = vector.load %arg3[%c1, %c0_7, %c0_8] : memref<3x384x128xbf16, #tpu.memory_space<vmem>>, vector<1x384x128xbf16>
    %15 = vector.shape_cast %14 : vector<1x384x128xbf16> to vector<384x128xbf16>
    %cst_9 = arith.constant dense<0.000000e+00> : vector<256x128xf32>
    %16 = tpu.matmul %13, %15, %cst_9 {dimension_numbers = #tpu.dot_dimension_numbers<[1], [0], [0], [1], [0, 0, 1, 1], [], []>} : vector<256x384xbf16>, vector<384x128xbf16>, vector<256x128xf32> -> vector<256x128xf32>
    %17 = arith.addf %12, %16 : vector<256x128xf32>
    %18 = vector.extract_strided_slice %6 {offsets = [32, 0], sizes = [256, 384], strides = [1, 1]} : vector<288x384xbf16> to vector<256x384xbf16>
    %c2 = arith.constant 2 : index
    %c0_10 = arith.constant 0 : index
    %c0_11 = arith.constant 0 : index
    %19 = vector.load %arg3[%c2, %c0_10, %c0_11] : memref<3x384x128xbf16, #tpu.memory_space<vmem>>, vector<1x384x128xbf16>
    %20 = vector.shape_cast %19 : vector<1x384x128xbf16> to vector<384x128xbf16>
    %cst_12 = arith.constant dense<0.000000e+00> : vector<256x128xf32>
    %21 = tpu.matmul %18, %20, %cst_12 {dimension_numbers = #tpu.dot_dimension_numbers<[1], [0], [0], [1], [0, 0, 1, 1], [], []>} : vector<256x384xbf16>, vector<384x128xbf16>, vector<256x128xf32> -> vector<256x128xf32>
    %22 = arith.addf %17, %21 : vector<256x128xf32>
    %23 = arith.truncf %22 : vector<256x128xf32> to vector<256x128xbf16>
    %c0_13 = arith.constant 0 : index
    %c0_14 = arith.constant 0 : index
    %c0_15 = arith.constant 0 : index
    %24 = vector.load %arg4[%c0_13, %c0_14, %c0_15] : memref<1x256x128xbf16, #tpu.memory_space<vmem>>, vector<1x256x128xbf16>
    %25 = vector.shape_cast %24 : vector<1x256x128xbf16> to vector<256x128xbf16>
    %26 = vector.shape_cast %23 : vector<256x128xbf16> to vector<1x256x128xbf16>
    tpu.vector_store %arg4[%c0_13, %c0_14, %c0_15], %26 {strides = array<i32>} : memref<1x256x128xbf16, #tpu.memory_space<vmem>>, vector<1x256x128xbf16>,
    %cst_16 = arith.constant dense<0.000000e+00> : vector<128xf32>
    %27 = vector.multi_reduction <add>, %22, %cst_16 [0] : vector<256x128xf32> to vector<128xf32>
    %28 = vector.shape_cast %27 : vector<128xf32> to vector<1x128xf32>
    %29 = vector.shape_cast %28 : vector<1x128xf32> to vector<1x1x128xf32>
    %c0_17 = arith.constant 0 : index
    %c0_18 = arith.constant 0 : index
    %c0_19 = arith.constant 0 : index
    %30 = vector.load %arg5[%c0_17, %c0_18, %c0_19] : memref<1x1x128xf32, #tpu.memory_space<vmem>>, vector<1x1x128xf32>
    tpu.vector_store %arg5[%c0_17, %c0_18, %c0_19], %29 {strides = array<i32>} : memref<1x1x128xf32, #tpu.memory_space<vmem>>, vector<1x1x128xf32>,
    %31 = arith.mulf %22, %22 : vector<256x128xf32>
    %cst_20 = arith.constant dense<0.000000e+00> : vector<128xf32>
    %32 = vector.multi_reduction <add>, %31, %cst_20 [0] : vector<256x128xf32> to vector<128xf32>
    %33 = vector.shape_cast %32 : vector<128xf32> to vector<1x128xf32>
    %34 = vector.shape_cast %33 : vector<1x128xf32> to vector<1x1x128xf32>
    %c0_21 = arith.constant 0 : index
    %c0_22 = arith.constant 0 : index
    %c0_23 = arith.constant 0 : index
    %35 = vector.load %arg6[%c0_21, %c0_22, %c0_23] : memref<1x1x128xf32, #tpu.memory_space<vmem>>, vector<1x1x128xf32>
    tpu.vector_store %arg6[%c0_21, %c0_22, %c0_23], %34 {strides = array<i32>} : memref<1x1x128xf32, #tpu.memory_space<vmem>>, vector<1x1x128xf32>,
    return
  }
  func.func @transform_0(%arg0: i32, %arg1: i32) -> (i32, i32, i32, i32) {
    %c0_i32 = arith.constant 0 : i32
    %c0_i32_0 = arith.constant 0 : i32
    %c0_i32_1 = arith.constant 0 : i32
    %c0_i32_2 = arith.constant 0 : i32
    return %arg1, %c0_i32, %c0_i32_0, %c0_i32_1 : i32, i32, i32, i32
  }
  func.func @transform_1(%arg0: i32, %arg1: i32) -> (i32, i32, i32) {
    %c0_i32 = arith.constant 0 : i32
    %c0_i32_0 = arith.constant 0 : i32
    %c0_i32_1 = arith.constant 0 : i32
    return %c0_i32, %c0_i32_0, %arg0 : i32, i32, i32
  }
  func.func @transform_2(%arg0: i32, %arg1: i32) -> (i32, i32, i32) {
    %c0_i32 = arith.constant 0 : i32
    %c0_i32_0 = arith.constant 0 : i32
    return %arg1, %c0_i32, %arg0 : i32, i32, i32
  }
  func.func @transform_3(%arg0: i32, %arg1: i32) -> (i32, i32, i32) {
    %c0_i32 = arith.constant 0 : i32
    %c0_i32_0 = arith.constant 0 : i32
    return %arg1, %c0_i32, %arg0 : i32, i32, i32
  }
  func.func @transform_4(%arg0: i32, %arg1: i32) -> (i32, i32, i32) {
    %c0_i32 = arith.constant 0 : i32
    %c0_i32_0 = arith.constant 0 : i32
    return %arg1, %c0_i32, %arg0 : i32, i32, i32
  }
}

</mosaic_0001>

<bundles_post_ra>
// kernel: bridge_forward.5
= control target key start
LH: loop header
LB: loop body
LE: loop exit
PB: predicated region body
PF: predicated region fallthrough
CT: control target
= control target key end

     0   :  { %s1413_s12 = smov 0   ;;  %s1415_s13 = smov 0   ;;  %s1820_s0 = inlined_call_operand.vmem [shape: bf16[2,256,128], index: 0, kind: input, shape index: {}]   ;;  %s1821_s1 = inlined_call_operand.vmem [shape: f32[1,128], index: 1, kind: input, shape index: {}]   ;;  %s1822_s2 = inlined_call_operand.vmem [shape: f32[1,128], index: 2, kind: input, shape index: {}]   ;;  %s1823_s3 = inlined_call_operand.vmem [shape: bf16[2,18,18,128], index: 3, kind: output, shape index: {}]  }
   0x1   :  { %s1417_s14 = smov 0  }
   0x2 LB: > { %s22_s15 = sadd.s32 1, %s1386_s13  ;;  %p1110_p0 = scmp.ge.s32.totalorder %s1390_s14, 1  ;;  %s1390_s14 = sphi %s1417_s14, %s13_s14   ;;  %s1386_s13 = sphi %s1415_s13, %s1831_s13   ;;  %s1382_s12 = sphi %s1413_s12, %s1830_s12  }
   0x3   : > { %p23_p1 = scmp.ge.s32.totalorder %s22_s15, 2  ;;  %p172_p2 = scmp.lt.s32.totalorder %s1390_s14, 3 }
   0x5   : > { %s1833_s15 = smov (%p23_p1, %s22_s15), 0  ;;  %p173_p3 = pnand %p1110_p0, %p172_p2 }
   0x6   : > { %p208_p4 = scmp.lt.s32.totalorder (!%p173_p3), %s1382_s12, 1 }
   0x7   : > { %176 = sbr.rel (%p173_p3) target bundleno = 122 (0x7a), region = 32 }
   0xc   : > { %s1835_s12 = smov (!%p208_p4, %s1382_s12), 1  ;;  %v1439_v0 = vld [vmem:[%s1821_s1] ss:$0 sm:$0xff]  ;;  %v1392_v4 = vmov 0   ;;  %vm879_vm0 = vcmask 1043456   ;;  %vm886_vm4 = vcmask 1040384  }
   0xd   : > { %s1342_s16 = smul.u32 216, %s1835_s12  ;;  %s1230_s17 = sshll.u32 %s1835_s12, 7  ;;  %vm880_vm1 = vsmask.f32 7938  ;;  %v1517_v10 = vld [vmem:[%s1822_s2] ss:$0 sm:$0xff] }
   0xe   : > { %s1434_s20 = scalar_lea.vmem %s1820_s0, %s1230_s17  ;;  %vm555_vm2 = vsmask.f32 256  ;;  %vm556_vm3 = vsmask.f32 4368  ;;  %vm1549_vm5 = vmand %vm879_vm0, %vm880_vm1 }
   0xf   : > { %s1444_s25 = scalar_lea.vmem %s1823_s3, %s1342_s16  ;;  %v1447_v1 = vld [vmem:[%s1434_s20] sm:$0xff]   ;;  %v1450_v2 = vld [vmem:[%s1434_s20 + $0x8] sm:$0xff]   ;;  %v1453_v3 = vld [vmem:[%s1434_s20 + $0x10] sm:$0xff]  }
  0x10   : > { %408 = vst [vmem:[%s1444_s25 + $0xc] sm:$0xf] %v1392_v4  ;;  %405 = vst [vmem:[%s1444_s25] sm:$0xf] %v1392_v4  ;;  %v1265_v5 = vunpack.c.l.bf16 %v1447_v1  ;;  %v1266_v6 = vunpack.c.h.bf16 %v1447_v1  ;;  %v1269_v7 = vunpack.c.l.bf16 %v1450_v2  ;;  %v1270_v8 = vunpack.c.h.bf16 %v1450_v2  ;;  %v1329_v9 = vld [vmem:[%s1434_s20 + $0x18] sm:$0xff]   ;;  %v1534_v27 = vld [vmem:[%s1434_s20 + $0x20] sm:$0xff]  }
  0x11   : > { %406 = vst [vmem:[%s1444_s25 + $0x4] sm:$0xf] %v1392_v4  ;;  %407 = vst [vmem:[%s1444_s25 + $0x8] sm:$0x1] %v1392_v4  ;;  %v1273_v11 = vunpack.c.l.bf16 %v1453_v3  ;;  %v1274_v12 = vunpack.c.h.bf16 %v1453_v3  ;;  %v1277_v13 = vunpack.c.l.bf16 %v1329_v9  ;;  %v1278_v14 = vunpack.c.h.bf16 %v1329_v9  ;;  %v1537_v28 = vld [vmem:[%s1434_s20 + $0x28] sm:$0xff]  }
  0x12   : > { %409 = vst [vmem:[%s1444_s25 + $0x10] sm:$0xf] %v1392_v4  ;;  %410 = vst [vmem:[%s1444_s25 + $0x14] sm:$0x1] %v1392_v4  ;;  %v302_v15 = vmul.f32 %v1265_v5, %v1439_v0  ;;  %v303_v16 = vmul.f32 %v1266_v6, %v1439_v0  ;;  %v304_v17 = vmul.f32 %v1269_v7, %v1439_v0  ;;  %v1281_v37 = vunpack.c.l.bf16 %v1534_v27 }
  0x13   : > { %411 = vst [vmem:[%s1444_s25 + $0x18] sm:$0xf] %v1392_v4  ;;  %412 = vst [vmem:[%s1444_s25 + $0x1c] sm:$0xf] %v1392_v4  ;;  %v305_v18 = vmul.f32 %v1270_v8, %v1439_v0  ;;  %v306_v19 = vmul.f32 %v1273_v11, %v1439_v0  ;;  %v307_v20 = vmul.f32 %v1274_v12, %v1439_v0  ;;  %v1282_v38 = vunpack.c.h.bf16 %v1534_v27 }
  0x14   : > { %413 = vst [vmem:[%s1444_s25 + $0x20] sm:$0x1] %v1392_v4  ;;  %414 = vst [vmem:[%s1444_s25 + $0x24] sm:$0xf] %v1392_v4  ;;  %v308_v21 = vmul.f32 %v1277_v13, %v1439_v0  ;;  %v309_v22 = vmul.f32 %v1278_v14, %v1439_v0  ;;  %v341_v23 = vadd.f32 %v1517_v10, %v302_v15  ;;  %v1285_v39 = vunpack.c.l.bf16 %v1537_v28 }
  0x15   : > { %415 = vst [vmem:[%s1444_s25 + $0x28] sm:$0xf] %v1392_v4  ;;  %416 = vst [vmem:[%s1444_s25 + $0x2c] sm:$0x1] %v1392_v4  ;;  %v342_v24 = vadd.f32 %v1517_v10, %v303_v16  ;;  %v343_v25 = vadd.f32 %v1517_v10, %v304_v17  ;;  %v344_v26 = vadd.f32 %v1517_v10, %v305_v18  ;;  %v1286_v40 = vunpack.c.h.bf16 %v1537_v28 }
  0x16   : > { %417 = vst [vmem:[%s1444_s25 + $0x30] sm:$0xf] %v1392_v4  ;;  %418 = vst [vmem:[%s1444_s25 + $0x34] sm:$0xf] %v1392_v4  ;;  %v345_v29 = vadd.f32 %v1517_v10, %v306_v19  ;;  %v346_v30 = vadd.f32 %v1517_v10, %v307_v20  ;;  %v347_v31 = vadd.f32 %v1517_v10, %v308_v21  ;;  %v373_v33 = vmax.f32 %v341_v23, 0.0 }
  0x17   : > { %419 = vst [vmem:[%s1444_s25 + $0x38] sm:$0x1] %v1392_v4  ;;  %420 = vst [vmem:[%s1444_s25 + $0x3c] sm:$0xf] %v1392_v4  ;;  %v348_v32 = vadd.f32 %v1517_v10, %v309_v22  ;;  %v374_v34 = vmax.f32 %v342_v24, 0.0  ;;  %v375_v35 = vmax.f32 %v343_v25, 0.0 }
  0x18   : > { %421 = vst [vmem:[%s1444_s25 + $0x40] sm:$0xf] %v1392_v4  ;;  %422 = vst [vmem:[%s1444_s25 + $0x44] sm:$0x1] %v1392_v4  ;;  %v376_v36 = vmax.f32 %v344_v26, 0.0  ;;  %v1231_v41 = vpack.c.bf16 %v373_v33, %v373_v33  ;;  %v377_v45 = vmax.f32 %v345_v29, 0.0 }
  0x19   : > { %423 = vst [vmem:[%s1444_s25 + $0x48] sm:$0xf] %v1392_v4  ;;  %424 = vst [vmem:[%s1444_s25 + $0x4c] sm:$0xf] %v1392_v4  ;;  %v1232_v42 = vpack.c.bf16 %v374_v34, %v374_v34  ;;  %v1233_v43 = vpack.c.bf16 %v375_v35, %v375_v35  ;;  %v378_v46 = vmax.f32 %v346_v30, 0.0  ;;  %v379_v47 = vmax.f32 %v347_v31, 0.0 }
  0x1a   : > { %425 = vst [vmem:[%s1444_s25 + $0x50] sm:$0x1] %v1392_v4  ;;  %426 = vst [vmem:[%s1444_s25 + $0x54] sm:$0xf] %v1392_v4  ;;  %v1234_v44 = vpack.c.bf16 %v376_v36, %v376_v36  ;;  %v380_v48 = vmax.f32 %v348_v32, 0.0  ;;  %v559_v49 = vshrl.u32 %v1231_v41, 16  ;;  %v1235_v61 = vpack.c.bf16 %v377_v45, %v377_v45 }
  0x1b   : > { %427 = vst [vmem:[%s1444_s25 + $0x58] sm:$0xf] %v1392_v4  ;;  %428 = vst [vmem:[%s1444_s25 + $0x5c] sm:$0x1] %v1392_v4  ;;  %v562_v50 = vshll.u32 %v1231_v41, 16  ;;  %v567_v51 = vshrl.u32 %v1232_v42, 16  ;;  %v1236_v62 = vpack.c.bf16 %v378_v46, %v378_v46  ;;  %v1237_v5 = vpack.c.bf16 %v379_v47, %v379_v47 }
  0x1c   : > { %429 = vst [vmem:[%s1444_s25 + $0x60] sm:$0xf] %v1392_v4  ;;  %430 = vst [vmem:[%s1444_s25 + $0x64] sm:$0xf] %v1392_v4  ;;  %v570_v52 = vshll.u32 %v1232_v42, 16  ;;  %v576_v54 = vshrl.u32 %v1233_v43, 16  ;;  %v1238_v6 = vpack.c.bf16 %v380_v48, %v380_v48  ;;  %v310_v36 = vmul.f32 %v1281_v37, %v1439_v0 }
  0x1d   : > { %431 = vst [vmem:[%s1444_s25 + $0x68] sm:$0x1] %v1392_v4  ;;  %432 = vst [vmem:[%s1444_s25 + $0x6c] sm:$0xf] %v1392_v4  ;;  %v579_v55 = vshll.u32 %v1233_v43, 16  ;;  %v584_v56 = vshrl.u32 %v1234_v44, 16 }
  0x1e   : > { %433 = vst [vmem:[%s1444_s25 + $0x70] sm:$0xf] %v1392_v4  ;;  %434 = vst [vmem:[%s1444_s25 + $0x74] sm:$0x1] %v1392_v4  ;;  %v587_v57 = vshll.u32 %v1234_v44, 16  ;;  %v561_v58 = vrot.slane %v559_v49, 7  ;;  %v349_v48 = vadd.f32 %v1517_v10, %v310_v36  ;;  %v311_v49 = vmul.f32 %v1282_v38, %v1439_v0 }
  0x1f   : > { %435 = vst [vmem:[%s1444_s25 + $0x78] sm:$0xf] %v1392_v4  ;;  %436 = vst [vmem:[%s1444_s25 + $0x7c] sm:$0xf] %v1392_v4  ;;  %v569_v60 = vrot.slane %v567_v51, 7  ;;  %v578_v3 = vrot.slane %v576_v54, 7 }
  0x20   : > { %437 = vst [vmem:[%s1444_s25 + $0x80] sm:$0x1] %v1392_v4  ;;  %438 = vst [vmem:[%s1444_s25 + $0x84] sm:$0xf] %v1392_v4  ;;  %v1148_v63 = vld [vmem:[%s1444_s25 + $0xc] sm:$0xf]  ;;  %v564_v7 = vor.u32 %v562_v50, %v561_v58  ;;  %v312_v50 = vmul.f32 %v1285_v39, %v1439_v0 }
  0x21   : > { %439 = vst [vmem:[%s1444_s25 + $0x88] sm:$0xf] %v1392_v4  ;;  %440 = vst [vmem:[%s1444_s25 + $0x8c] sm:$0x1] %v1392_v4  ;;  %v1151_v2 = vld [vmem:[%s1444_s25 + $0x14] sm:$0x1]  ;;  %v572_v9 = vor.u32 %v570_v52, %v569_v60  ;;  %v581_v14 = vor.u32 %v579_v55, %v578_v3 }
  0x22   : > { %441 = vst [vmem:[%s1444_s25 + $0x90] sm:$0xf] %v1392_v4  ;;  %442 = vst [vmem:[%s1444_s25 + $0x94] sm:$0xf] %v1392_v4  ;;  %v565_v8 = vrot.slane %v561_v58, 4  ;;  %v574_v11 = vrot.slane %v569_v60, 4  ;;  %v883_v18 = vsel %vm1549_vm5, %v564_v7, %v1148_v63  ;;  %v313_v7 = vmul.f32 %v1286_v40, %v1439_v0 }
  0x23   : > { %443 = vst [vmem:[%s1444_s25 + $0x98] sm:$0x1] %v1392_v4  ;;  %444 = vst [vmem:[%s1444_s25 + $0x9c] sm:$0xf] %v1392_v4  ;;  %v1153_v12 = vld [vmem:[%s1444_s25 + $0x18] sm:$0xf] }
  0x24   : > { %445 = vst [vmem:[%s1444_s25 + $0xa0] sm:$0xf] %v1392_v4  ;;  %446 = vst [vmem:[%s1444_s25 + $0xa4] sm:$0x1] %v1392_v4  ;;  %v1156_v13 = vld [vmem:[%s1444_s25 + $0x20] sm:$0x1]  ;;  %v892_v22 = vsel %vm1549_vm5, %v581_v14, %v1153_v12 }
  0x25   : > { %447 = vst [vmem:[%s1444_s25 + $0xa8] sm:$0xf] %v1392_v4  ;;  %448 = vst [vmem:[%s1444_s25 + $0xac] sm:$0xf] %v1392_v4  ;;  %v582_v15 = vrot.slane %v578_v3, 4  ;;  %v593_v21 = vshrl.u32 %v1235_v61, 16 }
  0x26   : > { %449 = vst [vmem:[%s1444_s25 + $0xb0] sm:$0x1] %v1392_v4  ;;  %450 = vst [vmem:[%s1444_s25 + $0xb4] sm:$0xf] %v1392_v4  ;;  %v596_v25 = vshll.u32 %v1235_v61, 16  ;;  %v601_v29 = vshrl.u32 %v1236_v62, 16 }
  0x27   : > { %451 = vst [vmem:[%s1444_s25 + $0xb8] sm:$0xf] %v1392_v4  ;;  %452 = vst [vmem:[%s1444_s25 + $0xbc] sm:$0x1] %v1392_v4  ;;  %v595_v26 = vrot.slane %v593_v21, 7  ;;  %v604_v30 = vshll.u32 %v1236_v62, 16  ;;  %v350_v62 = vadd.f32 %v1517_v10, %v311_v49 }
  0x28   : > { %453 = vst [vmem:[%s1444_s25 + $0xc0] sm:$0xf] %v1392_v4  ;;  %454 = vst [vmem:[%s1444_s25 + $0xc4] sm:$0xf] %v1392_v4  ;;  %v610_v31 = vshrl.u32 %v1237_v5, 16  ;;  %v613_v33 = vshll.u32 %v1237_v5, 16  ;;  %v351_v5 = vadd.f32 %v1517_v10, %v312_v50 }
  0x29   : > { %455 = vst [vmem:[%s1444_s25 + $0xc8] sm:$0x1] %v1392_v4  ;;  %456 = vst [vmem:[%s1444_s25 + $0xcc] sm:$0xf] %v1392_v4  ;;  %v1158_v32 = vld [vmem:[%s1444_s25 + $0x24] sm:$0xf]  ;;  %v598_v41 = vor.u32 %v596_v25, %v595_v26 }
  0x2a   : > { %457 = vst [vmem:[%s1444_s25 + $0xd0] sm:$0xf] %v1392_v4  ;;  %458 = vst [vmem:[%s1444_s25 + $0xd4] sm:$0x1] %v1392_v4  ;;  %v586_v4 = vrot.slane %v584_v56, 7  ;;  %v618_v34 = vshrl.u32 %v1238_v6, 16 }
  0x2b   : > { %vm1555_vm6 = vmor %vm555_vm2, %vm556_vm3  ;;  %1149 = vst [vmem:[%s1444_s25 + $0xc] sm:$0xf] %v883_v18  ;;  %v621_v35 = vshll.u32 %v1238_v6, 16  ;;  %v599_v42 = vrot.slane %v595_v26, 4  ;;  %v603_v43 = vrot.slane %v601_v29, 7  ;;  %v612_v44 = vrot.slane %v610_v31, 7 }
  0x2c   : > { %vm1562_vm7 = vmand %vm886_vm4, %vm555_vm2  ;;  %v589_v16 = vor.u32 %v587_v57, %v586_v4  ;;  %v591_v17 = vrot.slane %v586_v4, 4  ;;  %v573_v19 = vsel %vm1555_vm6, %v565_v8, %v572_v9  ;;  %1154 = vst [vmem:[%s1444_s25 + $0x18] sm:$0xf] %v892_v22  ;;  %v1161_v45 = vld [vmem:[%s1444_s25 + $0x2c] sm:$0x1]  ;;  %v620_v47 = vrot.slane %v618_v34, 7 }
  0x2d   : > { %v889_v20 = vsel %vm1562_vm7, %v574_v11, %v1151_v2  ;;  %1150 = vst [vmem:[%s1444_s25 + $0x10] sm:$0xf] %v573_v19  ;;  %v1163_v46 = vld [vmem:[%s1444_s25 + $0x30] sm:$0xf]  ;;  %v899_v37 = vsel %vm1549_vm5, %v598_v41, %v1158_v32  ;;  %v606_v51 = vor.u32 %v604_v30, %v603_v43  ;;  %v608_v52 = vrot.slane %v603_v43, 4  ;;  %v1333_v63 = vld [vmem:[%s1434_s20 + $0x38] sm:$0xff]  }
  0x2e   : > { %1152 = vst [vmem:[%s1444_s25 + $0x14] sm:$0x1] %v889_v20  ;;  %v590_v23 = vsel %vm1555_vm6, %v582_v15, %v589_v16  ;;  %v896_v24 = vsel %vm1562_vm7, %v591_v17, %v1156_v13  ;;  %v615_v54 = vor.u32 %v613_v33, %v612_v44  ;;  %v1166_v55 = vld [vmem:[%s1444_s25 + $0x38] sm:$0x1]  ;;  %1159 = vst [vmem:[%s1444_s25 + $0x24] sm:$0xf] %v899_v37  ;;  %v1293_v14 = vunpack.c.l.bf16 %v1333_v63 }
  0x2f   : > { %1155 = vst [vmem:[%s1444_s25 + $0x1c] sm:$0xf] %v590_v23  ;;  %1157 = vst [vmem:[%s1444_s25 + $0x20] sm:$0x1] %v896_v24  ;;  %v616_v56 = vrot.slane %v612_v44, 4  ;;  %v623_v57 = vor.u32 %v621_v35, %v620_v47  ;;  %v625_v27 = vrot.slane %v620_v47, 4  ;;  %v607_v39 = vsel %vm1555_vm6, %v599_v42, %v606_v51 }
  0x30   : > { %v381_v38 = vmax.f32 %v349_v48, 0.0  ;;  %v1332_v58 = vld [vmem:[%s1434_s20 + $0x30] sm:$0xff]   ;;  %v903_v60 = vsel %vm1562_vm7, %v608_v52, %v1161_v45  ;;  %v906_v61 = vsel %vm1549_vm5, %v615_v54, %v1163_v46  ;;  %1160 = vst [vmem:[%s1444_s25 + $0x28] sm:$0xf] %v607_v39  ;;  %v382_v6 = vmax.f32 %v350_v62, 0.0 }
  0x31   : > { %1162 = vst [vmem:[%s1444_s25 + $0x2c] sm:$0x1] %v903_v60  ;;  %1164 = vst [vmem:[%s1444_s25 + $0x30] sm:$0xf] %v906_v61  ;;  %v624_v2 = vsel %vm1555_vm6, %v616_v56, %v623_v57  ;;  %v910_v3 = vsel %vm1562_vm7, %v625_v27, %v1166_v55  ;;  %v1289_v8 = vunpack.c.l.bf16 %v1332_v58  ;;  %v1290_v9 = vunpack.c.h.bf16 %v1332_v58  ;;  %v1168_v40 = vld [vmem:[%s1444_s25 + $0x3c] sm:$0xf] }
  0x32   : > { %v1239_v4 = vpack.c.bf16 %v381_v38, %v381_v38  ;;  %1165 = vst [vmem:[%s1444_s25 + $0x34] sm:$0xf] %v624_v2  ;;  %1167 = vst [vmem:[%s1444_s25 + $0x38] sm:$0x1] %v910_v3  ;;  %v383_v13 = vmax.f32 %v351_v5, 0.0  ;;  %v1240_v15 = vpack.c.bf16 %v382_v6, %v382_v6  ;;  %v352_v16 = vadd.f32 %v1517_v10, %v313_v7  ;;  %v1334_v27 = vld [vmem:[%s1434_s20 + $0x40] sm:$0xff]  }
  0x33   : > { %v314_v17 = vmul.f32 %v1289_v8, %v1439_v0  ;;  %v315_v18 = vmul.f32 %v1290_v9, %v1439_v0  ;;  %v316_v21 = vmul.f32 %v1293_v14, %v1439_v0  ;;  %v1294_v28 = vunpack.c.h.bf16 %v1333_v63  ;;  %v1171_v41 = vld [vmem:[%s1444_s25 + $0x44] sm:$0x1]  ;;  %v1173_v47 = vld [vmem:[%s1444_s25 + $0x48] sm:$0xf]  ;;  %v1176_v58 = vld [vmem:[%s1444_s25 + $0x50] sm:$0x1] }
  0x34   : > { %v627_v11 = vshrl.u32 %v1239_v4, 16  ;;  %v630_v12 = vshll.u32 %v1239_v4, 16  ;;  %v1241_v20 = vpack.c.bf16 %v383_v13, %v383_v13  ;;  %v635_v22 = vshrl.u32 %v1240_v15, 16  ;;  %v1335_v8 = vld [vmem:[%s1434_s20 + $0x48] sm:$0xff]  }
  0x35   : > { %v638_v23 = vshll.u32 %v1240_v15, 16  ;;  %v384_v24 = vmax.f32 %v352_v16, 0.0  ;;  %v353_v25 = vadd.f32 %v1517_v10, %v314_v17  ;;  %v354_v35 = vadd.f32 %v1517_v10, %v315_v18 }
  0x36   : > { %v629_v19 = vrot.slane %v627_v11, 7  ;;  %v644_v30 = vshrl.u32 %v1241_v20, 16  ;;  %v647_v31 = vshll.u32 %v1241_v20, 16  ;;  %v637_v32 = vrot.slane %v635_v22, 7 }
  0x37   : > { %v1242_v33 = vpack.c.bf16 %v384_v24, %v384_v24  ;;  %v385_v34 = vmax.f32 %v353_v25, 0.0  ;;  %v355_v43 = vadd.f32 %v1517_v10, %v316_v21  ;;  %v317_v44 = vmul.f32 %v1294_v28, %v1439_v0  ;;  %v1183_v25 = vld [vmem:[%s1444_s25 + $0x60] sm:$0xf] }
  0x38   : > { %v632_v26 = vor.u32 %v630_v12, %v629_v19  ;;  %v633_v29 = vrot.slane %v629_v19, 4  ;;  %v646_v42 = vrot.slane %v644_v30, 7  ;;  %v640_v45 = vor.u32 %v638_v23, %v637_v32  ;;  %v1178_v12 = vld [vmem:[%s1444_s25 + $0x54] sm:$0xf]  ;;  %v1181_v19 = vld [vmem:[%s1444_s25 + $0x5c] sm:$0x1] }
  0x39   : > { %v642_v46 = vrot.slane %v637_v32, 4  ;;  %v652_v48 = vshrl.u32 %v1242_v33, 16  ;;  %v655_v49 = vshll.u32 %v1242_v33, 16  ;;  %v1243_v51 = vpack.c.bf16 %v385_v34, %v385_v34  ;;  %v1336_v33 = vld [vmem:[%s1434_s20 + $0x50] sm:$0xff]  }
  0x3a   : > { %v913_v36 = vsel %vm1549_vm5, %v632_v26, %v1168_v40  ;;  %v649_v50 = vor.u32 %v647_v31, %v646_v42  ;;  %v650_v37 = vrot.slane %v646_v42, 4  ;;  %v386_v52 = vmax.f32 %v354_v35, 0.0  ;;  %v1674_v42 = vld [vmem:[%s1434_s20 + $0x58] sm:$0xff]  }
  0x3b   : > { %1169 = vst [vmem:[%s1444_s25 + $0x3c] sm:$0xf] %v913_v36  ;;  %v641_v54 = vsel %vm1555_vm6, %v633_v29, %v640_v45  ;;  %v917_v55 = vsel %vm1562_vm7, %v642_v46, %v1171_v41  ;;  %v654_v56 = vrot.slane %v652_v48, 7  ;;  %v387_v57 = vmax.f32 %v355_v43, 0.0 }
  0x3c   : > { %1170 = vst [vmem:[%s1444_s25 + $0x40] sm:$0xf] %v641_v54  ;;  %1172 = vst [vmem:[%s1444_s25 + $0x44] sm:$0x1] %v917_v55  ;;  %v920_v38 = vsel %vm1549_vm5, %v649_v50, %v1173_v47  ;;  %v661_v39 = vshrl.u32 %v1243_v51, 16  ;;  %v664_v60 = vshll.u32 %v1243_v51, 16  ;;  %v1244_v61 = vpack.c.bf16 %v386_v52, %v386_v52 }
  0x3d   : > { %1174 = vst [vmem:[%s1444_s25 + $0x48] sm:$0xf] %v920_v38  ;;  %v657_v62 = vor.u32 %v655_v49, %v654_v56  ;;  %v659_v63 = vrot.slane %v654_v56, 4  ;;  %v1245_v2 = vpack.c.bf16 %v387_v57, %v387_v57  ;;  %v356_v3 = vadd.f32 %v1517_v10, %v317_v44 }
  0x3e   : > { %v663_v4 = vrot.slane %v661_v39, 7  ;;  %v669_v5 = vshrl.u32 %v1244_v61, 16  ;;  %v672_v6 = vshll.u32 %v1244_v61, 16  ;;  %v1297_v7 = vunpack.c.l.bf16 %v1334_v27 }
  0x3f   : > { %v658_v9 = vsel %vm1555_vm6, %v650_v37, %v657_v62  ;;  %v924_v11 = vsel %vm1562_vm7, %v659_v63, %v1176_v58  ;;  %v678_v13 = vshrl.u32 %v1245_v2, 16  ;;  %v681_v14 = vshll.u32 %v1245_v2, 16  ;;  %v1186_v37 = vld [vmem:[%s1444_s25 + $0x68] sm:$0x1] }
  0x40   : > { %1175 = vst [vmem:[%s1444_s25 + $0x4c] sm:$0xf] %v658_v9  ;;  %1177 = vst [vmem:[%s1444_s25 + $0x50] sm:$0x1] %v924_v11  ;;  %v666_v15 = vor.u32 %v664_v60, %v663_v4  ;;  %v667_v16 = vrot.slane %v663_v4, 4  ;;  %v671_v17 = vrot.slane %v669_v5, 7  ;;  %v318_v21 = vmul.f32 %v1297_v7, %v1439_v0 }
  0x41   : > { %v388_v18 = vmax.f32 %v356_v3, 0.0  ;;  %v680_v20 = vrot.slane %v678_v13, 7  ;;  %v1298_v28 = vunpack.c.h.bf16 %v1334_v27  ;;  %v1301_v40 = vunpack.c.l.bf16 %v1335_v8 }
  0x42   : > { %v927_v22 = vsel %vm1549_vm5, %v666_v15, %v1178_v12  ;;  %v674_v23 = vor.u32 %v672_v6, %v671_v17  ;;  %v676_v24 = vrot.slane %v671_v17, 4  ;;  %v357_v31 = vadd.f32 %v1517_v10, %v318_v21 }
  0x43   : > { %v1246_v26 = vpack.c.bf16 %v388_v18, %v388_v18  ;;  %1179 = vst [vmem:[%s1444_s25 + $0x54] sm:$0xf] %v927_v22  ;;  %v683_v29 = vor.u32 %v681_v14, %v680_v20  ;;  %v684_v30 = vrot.slane %v680_v20, 4  ;;  %v319_v32 = vmul.f32 %v1298_v28, %v1439_v0  ;;  %v1191_v18 = vld [vmem:[%s1444_s25 + $0x74] sm:$0x1] }
  0x44   : > { %v675_v34 = vsel %vm1555_vm6, %v667_v16, %v674_v23  ;;  %v931_v35 = vsel %vm1562_vm7, %v676_v24, %v1181_v19  ;;  %v389_v44 = vmax.f32 %v357_v31, 0.0  ;;  %v320_v46 = vmul.f32 %v1301_v40, %v1439_v0 }
  0x45   : > { %v686_v36 = vshrl.u32 %v1246_v26, 16  ;;  %v689_v41 = vshll.u32 %v1246_v26, 16  ;;  %1180 = vst [vmem:[%s1444_s25 + $0x58] sm:$0xf] %v675_v34  ;;  %1182 = vst [vmem:[%s1444_s25 + $0x5c] sm:$0x1] %v931_v35  ;;  %v934_v43 = vsel %vm1549_vm5, %v683_v29, %v1183_v25  ;;  %v358_v45 = vadd.f32 %v1517_v10, %v319_v32 }
  0x46   : > { %1184 = vst [vmem:[%s1444_s25 + $0x60] sm:$0xf] %v934_v43  ;;  %v1302_v48 = vunpack.c.h.bf16 %v1335_v8  ;;  %v1305_v49 = vunpack.c.l.bf16 %v1336_v33  ;;  %v1306_v50 = vunpack.c.h.bf16 %v1336_v33  ;;  %v1247_v51 = vpack.c.bf16 %v389_v44, %v389_v44  ;;  %v1188_v8 = vld [vmem:[%s1444_s25 + $0x6c] sm:$0xf]  ;;  %v1338_v25 = vld [vmem:[%s1434_s20 + $0x60] sm:$0xff]  }
  0x47   : > { %v688_v47 = vrot.slane %v686_v36, 7  ;;  %v390_v52 = vmax.f32 %v358_v45, 0.0  ;;  %v359_v54 = vadd.f32 %v1517_v10, %v320_v46  ;;  %v1309_v55 = vunpack.c.l.bf16 %v1674_v42  ;;  %v1193_v26 = vld [vmem:[%s1444_s25 + $0x78] sm:$0xf] }
  0x48   : > { %v321_v27 = vmul.f32 %v1302_v48, %v1439_v0  ;;  %v322_v38 = vmul.f32 %v1305_v49, %v1439_v0  ;;  %v695_v58 = vshrl.u32 %v1247_v51, 16  ;;  %v698_v39 = vshll.u32 %v1247_v51, 16  ;;  %v1198_v48 = vld [vmem:[%s1444_s25 + $0x84] sm:$0xf] }
  0x49   : > { %v691_v56 = vor.u32 %v689_v41, %v688_v47  ;;  %v693_v57 = vrot.slane %v688_v47, 4  ;;  %v1248_v60 = vpack.c.bf16 %v390_v52, %v390_v52  ;;  %v391_v61 = vmax.f32 %v359_v54, 0.0  ;;  %v1196_v47 = vld [vmem:[%s1444_s25 + $0x80] sm:$0x1] }
  0x4a   : > { %v360_v2 = vadd.f32 %v1517_v10, %v321_v27  ;;  %v361_v3 = vadd.f32 %v1517_v10, %v322_v38  ;;  %v697_v4 = vrot.slane %v695_v58, 7  ;;  %v323_v12 = vmul.f32 %v1306_v50, %v1439_v0  ;;  %v1339_v58 = vld [vmem:[%s1434_s20 + $0x68] sm:$0xff]  }
  0x4b   : > { %v692_v62 = vsel %vm1555_vm6, %v684_v30, %v691_v56  ;;  %v938_v63 = vsel %vm1562_vm7, %v693_v57, %v1186_v37  ;;  %v703_v5 = vshrl.u32 %v1248_v60, 16  ;;  %v706_v6 = vshll.u32 %v1248_v60, 16 }
  0x4c   : > { %1185 = vst [vmem:[%s1444_s25 + $0x64] sm:$0xf] %v692_v62  ;;  %1187 = vst [vmem:[%s1444_s25 + $0x68] sm:$0x1] %v938_v63  ;;  %v1249_v7 = vpack.c.bf16 %v391_v61, %v391_v61  ;;  %v392_v9 = vmax.f32 %v360_v2, 0.0  ;;  %v393_v11 = vmax.f32 %v361_v3, 0.0  ;;  %v324_v13 = vmul.f32 %v1309_v55, %v1439_v0 }
  0x4d   : > { %v700_v14 = vor.u32 %v698_v39, %v697_v4  ;;  %v701_v15 = vrot.slane %v697_v4, 4  ;;  %v705_v16 = vrot.slane %v703_v5, 7  ;;  %v362_v28 = vadd.f32 %v1517_v10, %v323_v12 }
  0x4e   : > { %v712_v17 = vshrl.u32 %v1249_v7, 16  ;;  %v715_v19 = vshll.u32 %v1249_v7, 16  ;;  %v1250_v20 = vpack.c.bf16 %v392_v9, %v392_v9  ;;  %v1251_v21 = vpack.c.bf16 %v393_v11, %v393_v11 }
  0x4f   : > { %v941_v40 = vsel %vm1549_vm5, %v700_v14, %v1188_v8  ;;  %v708_v22 = vor.u32 %v706_v6, %v705_v16  ;;  %v710_v23 = vrot.slane %v705_v16, 4  ;;  %v394_v44 = vmax.f32 %v362_v28, 0.0  ;;  %v1201_v8 = vld [vmem:[%s1444_s25 + $0x8c] sm:$0x1] }
  0x50   : > { %v714_v24 = vrot.slane %v712_v17, 7  ;;  %1189 = vst [vmem:[%s1444_s25 + $0x6c] sm:$0xf] %v941_v40  ;;  %v720_v29 = vshrl.u32 %v1250_v20, 16  ;;  %v723_v30 = vshll.u32 %v1250_v20, 16  ;;  %v729_v31 = vshrl.u32 %v1251_v21, 16 }
  0x51   : > { %v732_v32 = vshll.u32 %v1251_v21, 16  ;;  %v709_v33 = vsel %vm1555_vm6, %v701_v15, %v708_v22  ;;  %v945_v34 = vsel %vm1562_vm7, %v710_v23, %v1191_v18  ;;  %v363_v45 = vadd.f32 %v1517_v10, %v324_v13  ;;  %v1203_v22 = vld [vmem:[%s1444_s25 + $0x90] sm:$0xf] }
  0x52   : > { %v717_v35 = vor.u32 %v715_v19, %v714_v24  ;;  %v718_v36 = vrot.slane %v714_v24, 4  ;;  %1190 = vst [vmem:[%s1444_s25 + $0x70] sm:$0xf] %v709_v33  ;;  %1192 = vst [vmem:[%s1444_s25 + $0x74] sm:$0x1] %v945_v34  ;;  %v722_v41 = vrot.slane %v720_v29, 7  ;;  %v1310_v49 = vunpack.c.h.bf16 %v1674_v42 }
  0x53   : > { %v731_v43 = vrot.slane %v729_v31, 7  ;;  %v1313_v50 = vunpack.c.l.bf16 %v1338_v25  ;;  %v1314_v37 = vunpack.c.h.bf16 %v1338_v25  ;;  %v1252_v55 = vpack.c.bf16 %v394_v44, %v394_v44  ;;  %v1340_v25 = vld [vmem:[%s1434_s20 + $0x70] sm:$0xff]  }
  0x54   : > { %v948_v46 = vsel %vm1549_vm5, %v717_v35, %v1193_v26  ;;  %v725_v51 = vor.u32 %v723_v30, %v722_v41  ;;  %v727_v52 = vrot.slane %v722_v41, 4  ;;  %v395_v57 = vmax.f32 %v363_v45, 0.0  ;;  %v1206_v45 = vld [vmem:[%s1444_s25 + $0x98] sm:$0x1] }
  0x55   : > { %1194 = vst [vmem:[%s1444_s25 + $0x78] sm:$0xf] %v948_v46  ;;  %v734_v54 = vor.u32 %v732_v32, %v731_v43  ;;  %v735_v56 = vrot.slane %v731_v43, 4  ;;  %v325_v27 = vmul.f32 %v1310_v49, %v1439_v0  ;;  %v326_v38 = vmul.f32 %v1313_v50, %v1439_v0 }
  0x56   : > { %v726_v42 = vsel %vm1555_vm6, %v718_v36, %v725_v51  ;;  %v952_v39 = vsel %vm1562_vm7, %v727_v52, %v1196_v47  ;;  %v737_v61 = vshrl.u32 %v1252_v55, 16  ;;  %v740_v62 = vshll.u32 %v1252_v55, 16  ;;  %v1208_v51 = vld [vmem:[%s1444_s25 + $0x9c] sm:$0xf] }
  0x57   : > { %v955_v60 = vsel %vm1549_vm5, %v734_v54, %v1198_v48  ;;  %1195 = vst [vmem:[%s1444_s25 + $0x7c] sm:$0xf] %v726_v42  ;;  %1197 = vst [vmem:[%s1444_s25 + $0x80] sm:$0x1] %v952_v39  ;;  %v1253_v63 = vpack.c.bf16 %v395_v57, %v395_v57  ;;  %v364_v2 = vadd.f32 %v1517_v10, %v325_v27  ;;  %v1317_v6 = vunpack.c.l.bf16 %v1339_v58  ;;  %v1211_v42 = vld [vmem:[%s1444_s25 + $0xa4] sm:$0x1] }
  0x58   : > { %1199 = vst [vmem:[%s1444_s25 + $0x84] sm:$0xf] %v955_v60  ;;  %v365_v3 = vadd.f32 %v1517_v10, %v326_v38  ;;  %v739_v4 = vrot.slane %v737_v61, 7  ;;  %v327_v5 = vmul.f32 %v1314_v37, %v1439_v0  ;;  %v1318_v7 = vunpack.c.h.bf16 %v1339_v58 }
  0x59   : > { %v746_v9 = vshrl.u32 %v1253_v63, 16  ;;  %v749_v11 = vshll.u32 %v1253_v63, 16  ;;  %v396_v12 = vmax.f32 %v364_v2, 0.0  ;;  %v328_v17 = vmul.f32 %v1317_v6, %v1439_v0 }
  0x5a   : > { %v397_v13 = vmax.f32 %v365_v3, 0.0  ;;  %v742_v14 = vor.u32 %v740_v62, %v739_v4  ;;  %v744_v15 = vrot.slane %v739_v4, 4  ;;  %v366_v16 = vadd.f32 %v1517_v10, %v327_v5  ;;  %v1341_v3 = vld [vmem:[%s1434_s20 + $0x78] sm:$0xff]   ;;  %v1213_v4 = vld [vmem:[%s1444_s25 + $0xa8] sm:$0xf] }
  0x5b   : > { %v748_v18 = vrot.slane %v746_v9, 7  ;;  %v1254_v19 = vpack.c.bf16 %v396_v12, %v396_v12  ;;  %v329_v21 = vmul.f32 %v1318_v7, %v1439_v0  ;;  %v367_v24 = vadd.f32 %v1517_v10, %v328_v17 }
  0x5c   : > { %v1255_v20 = vpack.c.bf16 %v397_v13, %v397_v13  ;;  %v743_v28 = vsel %vm1555_vm6, %v735_v56, %v742_v14  ;;  %v959_v40 = vsel %vm1562_vm7, %v744_v15, %v1201_v8  ;;  %v398_v23 = vmax.f32 %v366_v16, 0.0 }
  0x5d   : > { %1200 = vst [vmem:[%s1444_s25 + $0x88] sm:$0xf] %v743_v28  ;;  %1202 = vst [vmem:[%s1444_s25 + $0x8c] sm:$0x1] %v959_v40  ;;  %v751_v26 = vor.u32 %v749_v11, %v748_v18  ;;  %v752_v29 = vrot.slane %v748_v18, 4  ;;  %v754_v30 = vshrl.u32 %v1254_v19, 16  ;;  %v368_v43 = vadd.f32 %v1517_v10, %v329_v21 }
  0x5e   : > { %v757_v31 = vshll.u32 %v1254_v19, 16  ;;  %v763_v32 = vshrl.u32 %v1255_v20, 16  ;;  %v766_v33 = vshll.u32 %v1255_v20, 16  ;;  %v1256_v34 = vpack.c.bf16 %v398_v23, %v398_v23  ;;  %v1216_v19 = vld [vmem:[%s1444_s25 + $0xb0] sm:$0x1] }
  0x5f   : > { %v399_v35 = vmax.f32 %v367_v24, 0.0  ;;  %v962_v36 = vsel %vm1549_vm5, %v751_v26, %v1203_v22  ;;  %v756_v41 = vrot.slane %v754_v30, 7  ;;  %v1321_v44 = vunpack.c.l.bf16 %v1340_v25 }
  0x60   : > { %1204 = vst [vmem:[%s1444_s25 + $0x90] sm:$0xf] %v962_v36  ;;  %v765_v46 = vrot.slane %v763_v32, 7  ;;  %v771_v47 = vshrl.u32 %v1256_v34, 16  ;;  %v774_v48 = vshll.u32 %v1256_v34, 16  ;;  %v400_v52 = vmax.f32 %v368_v43, 0.0 }
  0x61   : > { %v1257_v49 = vpack.c.bf16 %v399_v35, %v399_v35  ;;  %v759_v50 = vor.u32 %v757_v31, %v756_v41  ;;  %v761_v37 = vrot.slane %v756_v41, 4  ;;  %v330_v54 = vmul.f32 %v1321_v44, %v1439_v0  ;;  %v1218_v35 = vld [vmem:[%s1444_s25 + $0xb4] sm:$0xf] }
  0x62   : > { %v768_v55 = vor.u32 %v766_v33, %v765_v46  ;;  %v769_v56 = vrot.slane %v765_v46, 4  ;;  %v773_v57 = vrot.slane %v771_v47, 7  ;;  %v1258_v60 = vpack.c.bf16 %v400_v52, %v400_v52  ;;  %v1221_v52 = vld [vmem:[%s1444_s25 + $0xbc] sm:$0x1] }
  0x63   : > { %v780_v27 = vshrl.u32 %v1257_v49, 16  ;;  %v760_v38 = vsel %vm1555_vm6, %v752_v29, %v759_v50  ;;  %v966_v58 = vsel %vm1562_vm7, %v761_v37, %v1206_v45  ;;  %v783_v39 = vshll.u32 %v1257_v49, 16 }
  0x64   : > { %1205 = vst [vmem:[%s1444_s25 + $0x94] sm:$0xf] %v760_v38  ;;  %1207 = vst [vmem:[%s1444_s25 + $0x98] sm:$0x1] %v966_v58  ;;  %v969_v61 = vsel %vm1549_vm5, %v768_v55, %v1208_v51  ;;  %v776_v62 = vor.u32 %v774_v48, %v773_v57  ;;  %v778_v63 = vrot.slane %v773_v57, 4  ;;  %v788_v5 = vshrl.u32 %v1258_v60, 16 }
  0x65   : > { %v782_v2 = vrot.slane %v780_v27, 7  ;;  %1209 = vst [vmem:[%s1444_s25 + $0x9c] sm:$0xf] %v969_v61  ;;  %v791_v6 = vshll.u32 %v1258_v60, 16  ;;  %v369_v7 = vadd.f32 %v1517_v10, %v330_v54  ;;  %v1322_v8 = vunpack.c.h.bf16 %v1340_v25  ;;  %v1223_v38 = vld [vmem:[%s1444_s25 + $0xc0] sm:$0xf] }
  0x66   : > { %v777_v9 = vsel %vm1555_vm6, %v769_v56, %v776_v62  ;;  %v973_v11 = vsel %vm1562_vm7, %v778_v63, %v1211_v42  ;;  %v790_v14 = vrot.slane %v788_v5, 7  ;;  %v1325_v17 = vunpack.c.l.bf16 %v1341_v3  ;;  %v1226_v61 = vld [vmem:[%s1444_s25 + $0xc8] sm:$0x1] }
  0x67   : > { %v785_v12 = vor.u32 %v783_v39, %v782_v2  ;;  %v786_v13 = vrot.slane %v782_v2, 4  ;;  %1210 = vst [vmem:[%s1444_s25 + $0xa0] sm:$0xf] %v777_v9  ;;  %1212 = vst [vmem:[%s1444_s25 + $0xa4] sm:$0x1] %v973_v11  ;;  %v401_v15 = vmax.f32 %v369_v7, 0.0  ;;  %v331_v16 = vmul.f32 %v1322_v8, %v1439_v0 }
  0x68   : > { %v1326_v20 = vunpack.c.h.bf16 %v1341_v3  ;;  %v793_v21 = vor.u32 %v791_v6, %v790_v14  ;;  %v795_v28 = vrot.slane %v790_v14, 4  ;;  %v332_v23 = vmul.f32 %v1325_v17, %v1439_v0 }
  0x69   : > { %v976_v18 = vsel %vm1549_vm5, %v785_v12, %v1213_v4  ;;  %v1259_v40 = vpack.c.bf16 %v401_v15, %v401_v15  ;;  %v370_v22 = vadd.f32 %v1517_v10, %v331_v16 }
  0x6a   : > { %1214 = vst [vmem:[%s1444_s25 + $0xa8] sm:$0xf] %v976_v18  ;;  %v333_v24 = vmul.f32 %v1326_v20, %v1439_v0  ;;  %v794_v25 = vsel %vm1555_vm6, %v786_v13, %v793_v21  ;;  %v980_v26 = vsel %vm1562_vm7, %v795_v28, %v1216_v19  ;;  %v371_v32 = vadd.f32 %v1517_v10, %v332_v23 }
  0x6b   : > { %v797_v29 = vshrl.u32 %v1259_v40, 16  ;;  %v800_v30 = vshll.u32 %v1259_v40, 16  ;;  %1215 = vst [vmem:[%s1444_s25 + $0xac] sm:$0xf] %v794_v25  ;;  %1217 = vst [vmem:[%s1444_s25 + $0xb0] sm:$0x1] %v980_v26 }
  0x6c   : > { %v402_v31 = vmax.f32 %v370_v22, 0.0  ;;  %v372_v33 = vadd.f32 %v1517_v10, %v333_v24  ;;  %v403_v36 = vmax.f32 %v371_v32, 0.0 }
  0x6d   : > { %v799_v34 = vrot.slane %v797_v29, 7 }
  0x6e   : > { %v1260_v0 = vpack.c.bf16 %v402_v31, %v402_v31  ;;  %v404_v41 = vmax.f32 %v372_v33, 0.0  ;;  %v1261_v46 = vpack.c.bf16 %v403_v36, %v403_v36 }
  0x6f   : > { %v802_v43 = vor.u32 %v800_v30, %v799_v34  ;;  %v803_v49 = vrot.slane %v799_v34, 4 }
  0x70   : > { %v805_v44 = vshrl.u32 %v1260_v0, 16  ;;  %v808_v45 = vshll.u32 %v1260_v0, 16  ;;  %v1262_v47 = vpack.c.bf16 %v404_v41, %v404_v41  ;;  %v814_v10 = vshrl.u32 %v1261_v46, 16 }
  0x71   : > { %v983_v48 = vsel %vm1549_vm5, %v802_v43, %v1218_v35  ;;  %v817_v37 = vshll.u32 %v1261_v46, 16 }
  0x72   : > { %1219 = vst [vmem:[%s1444_s25 + $0xb4] sm:$0xf] %v983_v48  ;;  %v807_v50 = vrot.slane %v805_v44, 7  ;;  %v822_v51 = vshrl.u32 %v1262_v47, 16  ;;  %v825_v54 = vshll.u32 %v1262_v47, 16  ;;  %v816_v57 = vrot.slane %v814_v10, 7 }
  0x74   : > { %v810_v55 = vor.u32 %v808_v45, %v807_v50  ;;  %v812_v56 = vrot.slane %v807_v50, 4  ;;  %v824_v27 = vrot.slane %v822_v51, 7  ;;  %v819_v39 = vor.u32 %v817_v37, %v816_v57 }
  0x75   : > { %v820_v60 = vrot.slane %v816_v57, 4 }
  0x76   : > { %v811_v58 = vsel %vm1555_vm6, %v803_v49, %v810_v55  ;;  %v987_v42 = vsel %vm1562_vm7, %v812_v56, %v1221_v52  ;;  %v827_v62 = vor.u32 %v825_v54, %v824_v27  ;;  %v829_v63 = vrot.slane %v824_v27, 4 }
  0x77   : > { %1220 = vst [vmem:[%s1444_s25 + $0xb8] sm:$0xf] %v811_v58  ;;  %1222 = vst [vmem:[%s1444_s25 + $0xbc] sm:$0x1] %v987_v42  ;;  %v990_v2 = vsel %vm1549_vm5, %v819_v39, %v1223_v38 }
  0x78   : > { %1224 = vst [vmem:[%s1444_s25 + $0xc0] sm:$0xf] %v990_v2  ;;  %v828_v3 = vsel %vm1555_vm6, %v820_v60, %v827_v62  ;;  %v994_v4 = vsel %vm1562_vm7, %v829_v63, %v1226_v61 }
  0x79   : > { %1225 = vst [vmem:[%s1444_s25 + $0xc4] sm:$0xf] %v828_v3  ;;  %1227 = vst [vmem:[%s1444_s25 + $0xc8] sm:$0x1] %v994_v4 }
  0x7a PF: > { %s13_s14 = sadd.s32 1, %s1390_s14   ;;  %s1830_s12 = smov %s1386_s13 }
  0x7b   : > { %p10_p5 = scmp.ge.s32.totalorder %s13_s14, 4   ;;  %s1831_s13 = smov %s1833_s15 }
  0x7d   :  { %12 = sbr.rel (!%p10_p5) target bundleno = 2 (0x2), region = 69 }

// kernel: bridge_forward.4
= control target key start
LH: loop header
LB: loop body
LE: loop exit
PB: predicated region body
PF: predicated region fallthrough
CT: control target
= control target key end

     0   :  { %s3932_s15 = smov 0   ;;  %s3934_s16 = smov 0   ;;  %s5059_s0 = inlined_call_operand.vmem [shape: bf16[2,18,18,128], index: 0, kind: input, shape index: {}]   ;;  %s5060_s1 = inlined_call_operand.vmem [shape: bf16[3,384,128], index: 1, kind: input, shape index: {}]   ;;  %s5061_s2 = inlined_call_operand.vmem [shape: bf16[2,256,128], index: 2, kind: output, shape index: {0}]   ;;  %s5062_s3 = inlined_call_operand.vmem [shape: f32[2,1,128], index: 3, kind: output, shape index: {1}]   ;;  %s5063_s4 = inlined_call_operand.vmem [shape: f32[2,1,128], index: 4, kind: output, shape index: {2}]  }
   0x1   :  { %s3936_s17 = smov 0  }
   0x2 LB: > { %s24_s18 = sadd.s32 1, %s3901_s16  ;;  %p2805_p0 = scmp.ge.s32.totalorder %s3905_s17, 1  ;;  %s3905_s17 = sphi %s3936_s17, %s15_s17   ;;  %s3901_s16 = sphi %s3934_s16, %s5095_s16   ;;  %s3897_s15 = sphi %s3932_s15, %s5094_s15  }
   0x3   : > { %p25_p1 = scmp.ge.s32.totalorder %s24_s18, 2  ;;  %p194_p2 = scmp.lt.s32.totalorder %s3905_s17, 3 }
   0x5   : > { %s5097_s18 = smov (%p25_p1, %s24_s18), 0  ;;  %p195_p3 = pnand %p2805_p0, %p194_p2 }
   0x7   : > { %198 = sbr.rel (%p195_p3) target bundleno = 550 (0x226), region = 28 }
   0xc   : > { %v3768_v0 = vld [vmem:[%s5060_s1 + $0x138] sm:$0xff]   ;;  %v3770_v2 = vld [vmem:[%s5060_s1 + $0x130] sm:$0xff]   ;;  %p239_p4 = scmp.lt.s32.totalorder %s3897_s15, 1  ;;  %v3772_v4 = vld [vmem:[%s5060_s1 + $0x128] sm:$0xff]   ;;  %vm485_vm0 = vsmask.f32 7424 }
   0xd   : > { %v3769_v1 = vld [vmem:[%s5060_s1 + $0xf8] sm:$0xff]   ;;  %3175 = vmatprep.subr.bf16.mxu0 %v3768_v0  ;;  %3727 = vmatprep.subr.bf16.mxu1 %v3768_v0  ;;  %v3771_v3 = vld [vmem:[%s5060_s1 + $0xf0] sm:$0xff]   ;;  %v3773_v5 = vld [vmem:[%s5060_s1 + $0xe8] sm:$0xff]   ;;  %vm720_vm1 = vcmask 1046528  }
   0xe   : > { %3176 = vmatpush3.bf16.msra.mxu0 %v3769_v1  ;;  %3735 = vmatpush3.bf16.msra.mxu1 %v3769_v1  ;;  %s5099_s15 = smov (!%p239_p4, %s3897_s15), 1  ;;  %v3774_v6 = vld [vmem:[%s5060_s1 + $0x120] sm:$0xff]   ;;  %v3776_v8 = vld [vmem:[%s5060_s1 + $0x118] sm:$0xff]   ;;  %v3778_v10 = vld [vmem:[%s5060_s1 + $0x110] sm:$0xff]  }
   0xf   : > { %3177 = vmatprep.subr.bf16.mxu0 %v3770_v2  ;;  %3728 = vmatprep.subr.bf16.mxu1 %v3770_v2  ;;  %s3743_s7 = smul.u32 216, %s5099_s15  ;;  %v3775_v7 = vld [vmem:[%s5060_s1 + $0xe0] sm:$0xff]   ;;  %v3777_v9 = vld [vmem:[%s5060_s1 + $0xd8] sm:$0xff]   ;;  %v3779_v11 = vld [vmem:[%s5060_s1 + $0xd0] sm:$0xff]   ;;  %s261_s24 = scalar_lea.vmem %s5062_s3, %s5099_s15 }
  0x10   : > { %v3780_v18 = vld [vmem:[%s5060_s1 + $0x108] sm:$0xff]   ;;  %v3782_v26 = vld [vmem:[%s5060_s1 + $0x100] sm:$0xff]   ;;  %v3788_v36 = vld [vmem:[%s5060_s1 + $0x178] sm:$0xff]   ;;  %s267_s27 = scalar_lea.vmem %s5063_s4, %s5099_s15 }
  0x11   : > { %s3986_s20 = scalar_lea.vmem %s5059_s0, %s3743_s7  ;;  %v3781_v24 = vld [vmem:[%s5060_s1 + $0xc8] sm:$0xff]   ;;  %v3783_v31 = vld [vmem:[%s5060_s1 + $0xc0] sm:$0xff]   ;;  %v3789_v44 = vld [vmem:[%s5060_s1 + $0xb8] sm:$0xff]  }
  0x12   : > { %3178 = vmatpush3.bf16.msra.mxu0 %v3771_v3  ;;  %3736 = vmatpush3.bf16.msra.mxu1 %v3771_v3  ;;  %v3995_v12 = vld [vmem:[%s3986_s20 + $0xc] sm:$0xff]   ;;  %v3998_v13 = vld [vmem:[%s3986_s20 + $0x14] ss:$0 sps:$4 sm:$0x11]   ;;  %v4004_v17 = vld [vmem:[%s3986_s20 + $0x9c] sm:$0xff]  }
  0x13   : > { %3179 = vmatprep.subr.bf16.mxu0 %v3772_v4  ;;  %3729 = vmatprep.subr.bf16.mxu1 %v3772_v4  ;;  %v499_v14 = vshrl.u32 %v3995_v12, 16  ;;  %v501_v15 = vshll.u32 %v3995_v12, 16  ;;  %v506_v16 = vshll.u32 %v3998_v13, 16  ;;  %v4010_v19 = vld [vmem:[%s3986_s20 + $0xa4] ss:$0 sps:$4 sm:$0x11]  }
  0x14   : > { %v643_v22 = vshrl.u32 %v4004_v17, 16  ;;  %v645_v23 = vshll.u32 %v4004_v17, 16  ;;  %v650_v25 = vshll.u32 %v4010_v19, 16  ;;  %v4022_v30 = vld [vmem:[%s3986_s20 + $0x18] sm:$0xff]   ;;  %v4034_v35 = vld [vmem:[%s3986_s20 + $0xa8] sm:$0xff]   ;;  %v3790_v49 = vld [vmem:[%s5060_s1 + $0x170] sm:$0xff]  }
  0x15   : > { %v503_v20 = vrot.slane %v501_v15, 1  ;;  %v508_v21 = vrot.slane %v506_v16, 1  ;;  %v4031_v34 = vld [vmem:[%s3986_s20 + $0x20] ss:$0 sps:$4 sm:$0x11]   ;;  %v511_v37 = vshrl.u32 %v4022_v30, 16 }
  0x16   : > { %3180 = vmatpush3.bf16.msra.mxu0 %v3773_v5  ;;  %3737 = vmatpush3.bf16.msra.mxu1 %v3773_v5  ;;  %v647_v28 = vrot.slane %v645_v23, 1  ;;  %v652_v29 = vrot.slane %v650_v25, 1  ;;  %v513_v38 = vshll.u32 %v4022_v30, 16  ;;  %v518_v40 = vshll.u32 %v4031_v34, 16  ;;  %v3797_v53 = vld [vmem:[%s5060_s1 + $0xb0] sm:$0xff]   ;;  %v4063_v54 = vld [vmem:[%s3986_s20 + $0x24] sm:$0xff]  }
  0x17   : > { %3181 = vmatprep.subr.bf16.mxu0 %v3774_v6  ;;  %3730 = vmatprep.subr.bf16.mxu1 %v3774_v6  ;;  %v504_v27 = vor.u32 %v503_v20, %v499_v14  ;;  %v4047_v41 = vld [vmem:[%s3986_s20 + $0xb0] ss:$0 sps:$4 sm:$0x11]   ;;  %v655_v42 = vshrl.u32 %v4034_v35, 16  ;;  %v657_v43 = vshll.u32 %v4034_v35, 16  ;;  %v523_v58 = vshrl.u32 %v4063_v54, 16 }
  0x18   : > { %v648_v33 = vor.u32 %v647_v28, %v643_v22  ;;  %v515_v45 = vrot.slane %v513_v38, 1  ;;  %v520_v46 = vrot.slane %v518_v40, 1  ;;  %v662_v48 = vshll.u32 %v4047_v41, 16  ;;  %v4066_v55 = vld [vmem:[%s3986_s20 + $0x2c] ss:$0 sps:$4 sm:$0x11]  }
  0x19   : > { %v4028_v32 = vsel %vm485_vm0, %v504_v27, %v508_v21  ;;  %v659_v47 = vrot.slane %v657_v43, 1  ;;  %v525_v59 = vshll.u32 %v4063_v54, 16  ;;  %v530_v60 = vshll.u32 %v4066_v55, 16  ;;  %v4080_v61 = vld [vmem:[%s3986_s20 + $0xb4] sm:$0xff]   ;;  %v3795_v62 = vld [vmem:[%s5060_s1 + $0x168] sm:$0xff]   ;;  %v3796_v5 = vld [vmem:[%s5060_s1 + $0x160] sm:$0xff]  }
  0x1a   : > { %3182 = vmatpush3.bf16.msra.mxu0 %v3775_v7  ;;  %3738 = vmatpush3.bf16.msra.mxu1 %v3775_v7  ;;  %v4043_v39 = vsel %vm485_vm0, %v648_v33, %v652_v29  ;;  %v516_v50 = vor.u32 %v515_v45, %v511_v37  ;;  %v664_v52 = vrot.slane %v662_v48, 1  ;;  %v4086_v63 = vld [vmem:[%s3986_s20 + $0xbc] ss:$0 sps:$4 sm:$0x11]   ;;  %v667_v2 = vshrl.u32 %v4080_v61, 16  ;;  %v4109_v20 = vld [vmem:[%s3986_s20 + $0xc0] sm:$0xff]  }
  0x1b   : > { %3183 = vmatprep.subr.bf16.mxu0 %v3776_v8  ;;  %3731 = vmatprep.subr.bf16.mxu1 %v3776_v8  ;;  %v660_v51 = vor.u32 %v659_v47, %v655_v42  ;;  %v527_v0 = vrot.slane %v525_v59, 1  ;;  %v532_v1 = vrot.slane %v530_v60, 1  ;;  %v669_v3 = vshll.u32 %v4080_v61, 16  ;;  %v4097_v8 = vld [vmem:[%s3986_s20 + $0x30] sm:$0xff]   ;;  %v3802_v23 = vld [vmem:[%s5060_s1 + $0x158] sm:$0xff]   ;;  %v3809_v25 = vld [vmem:[%s5060_s1 + $0xa8] sm:$0xff]  }
  0x1c   : > { %1066 = vmatprep.mubr.bf16.mxu0 %v4028_v32  ;;  %1162 = vmatprep.mubr.bf16.mxu1 %v4043_v39  ;;  %v4069_v56 = vsel %vm485_vm0, %v516_v50, %v520_v46  ;;  %v674_v4 = vshll.u32 %v4086_v63, 16  ;;  %v535_v15 = vshrl.u32 %v4097_v8, 16  ;;  %v537_v16 = vshll.u32 %v4097_v8, 16  ;;  %v4112_v21 = vld [vmem:[%s3986_s20 + $0xc8] ss:$0 sps:$4 sm:$0x11]  }
  0x1d   : > { %v4074_v57 = vsel %vm485_vm0, %v660_v51, %v664_v52  ;;  %v528_v6 = vor.u32 %v527_v0, %v523_v58  ;;  %v671_v7 = vrot.slane %v669_v3, 1  ;;  %v679_v27 = vshrl.u32 %v4109_v20, 16  ;;  %v4131_v37 = vld [vmem:[%s3986_s20 + $0x3c] sm:$0xff]   ;;  %v4134_v40 = vld [vmem:[%s3986_s20 + $0x44] ss:$0 sps:$4 sm:$0x11]  }
  0x1e   : > { %3184 = vmatpush3.bf16.msra.mxu0 %v3777_v9  ;;  %3739 = vmatpush3.bf16.msra.mxu1 %v3777_v9  ;;  %v676_v9 = vrot.slane %v674_v4, 1  ;;  %v681_v28 = vshll.u32 %v4109_v20, 16  ;;  %v686_v29 = vshll.u32 %v4112_v21, 16  ;;  %v549_v42 = vshll.u32 %v4131_v37, 16  ;;  %v3803_v43 = vld [vmem:[%s5060_s1 + $0x150] sm:$0xff]   ;;  %v3815_v51 = vld [vmem:[%s5060_s1 + $0xa0] sm:$0xff]  }
  0x1f   : > { %3185 = vmatprep.subr.bf16.mxu0 %v3778_v10  ;;  %3732 = vmatprep.subr.bf16.mxu1 %v3778_v10  ;;  %v4100_v10 = vld [vmem:[%s3986_s20 + $0x38] ss:$0 sps:$4 sm:$0x11]   ;;  %v672_v14 = vor.u32 %v671_v7, %v667_v2  ;;  %v547_v45 = vshrl.u32 %v4131_v37, 16  ;;  %v554_v48 = vshll.u32 %v4134_v40, 16  ;;  %v724_v59 = vrot.slane %v3995_v12, 1 }
  0x20   : > { %v683_v33 = vrot.slane %v681_v28, 1  ;;  %v551_v47 = vrot.slane %v549_v42, 1  ;;  %v4162_v58 = vld [vmem:[%s3986_s20 + $0x50] ss:$0 sps:$4 sm:$0x11]   ;;  %v725_v60 = vrot.slane %v3998_v13, 1 }
  0x21   : > { %v4117_v22 = vsel %vm485_vm0, %v672_v14, %v676_v9  ;;  %v556_v50 = vrot.slane %v554_v48, 1  ;;  %v566_v13 = vshll.u32 %v4162_v58, 16  ;;  %v4179_v4 = vld [vmem:[%s3986_s20 + $0x54] sm:$0xff]   ;;  %v4190_v9 = vld [vmem:[%s3986_s20 + $0x5c] ss:$0 sps:$4 sm:$0x11]  }
  0x22   : > { %3186 = vmatpush3.bf16.msra.mxu0 %v3779_v11  ;;  %3740 = vmatpush3.bf16.msra.mxu1 %v3779_v11  ;;  %v4103_v11 = vsel %vm485_vm0, %v528_v6, %v532_v1  ;;  %v684_v38 = vor.u32 %v683_v33, %v679_v27  ;;  %v552_v52 = vor.u32 %v551_v47, %v547_v45  ;;  %v728_v6 = vrot.slane %v4031_v34, 1  ;;  %v3813_v7 = vld [vmem:[%s5060_s1 + $0x78] sm:$0xff]   ;;  %v4216_v33 = vld [vmem:[%s3986_s20 + $0x60] sm:$0xff]   ;;  %v3829_v47 = vld [vmem:[%s5060_s1 + $0x90] sm:$0xff]  }
  0x23   : > { %3187 = vmatprep.subr.bf16.mxu0 %v3780_v18  ;;  %3733 = vmatprep.subr.bf16.mxu1 %v3780_v18  ;;  %v542_v18 = vshll.u32 %v4100_v10, 16  ;;  %v4176_v3 = vsel %vm720_vm1, %v724_v59, %v725_v60  ;;  %v731_v34 = vrot.slane %v4066_v55, 1  ;;  %v3818_v55 = vld [vmem:[%s5060_s1 + $0x70] sm:$0xff]   ;;  %v571_v27 = vshrl.u32 %v4179_v4, 16  ;;  %v3823_v59 = vld [vmem:[%s5060_s1 + $0x28] sm:$0xff]  }
  0x24   : > { %v4172_v2 = vsel %vm485_vm0, %v552_v52, %v556_v50  ;;  %v578_v28 = vshll.u32 %v4190_v9, 16  ;;  %v737_v42 = vrot.slane %v4134_v40, 1  ;;  %v585_v40 = vshll.u32 %v4216_v33, 16 }
  0x26   : > { %3188 = vmatpush3.bf16.msra.mxu0 %v3781_v24  ;;  %3741 = vmatpush3.bf16.msra.mxu1 %v3781_v24  ;;  %v539_v24 = vrot.slane %v537_v16, 1  ;;  %v573_v16 = vshll.u32 %v4179_v4, 16  ;;  %v580_v45 = vrot.slane %v578_v28, 1  ;;  %v3835_v28 = vld [vmem:[%s5060_s1 + $0x18] sm:$0xff]  }
  0x27   : > { %3189 = vmatprep.subr.bf16.mxu0 %v3782_v26  ;;  %3734 = vmatprep.subr.bf16.mxu1 %v3782_v26  ;;  %v544_v26 = vrot.slane %v542_v18, 1  ;;  %v3824_v18 = vld [vmem:[%s5060_s1 + $0x98] sm:$0xff]  }
  0x2a   : > { %3190 = vmatpush3.bf16.msra.mxu0 %v3783_v31  ;;  %3742 = vmatpush3.bf16.msra.mxu1 %v3783_v31  ;;  %v540_v31 = vor.u32 %v539_v24, %v535_v15  ;;  %v568_v15 = vrot.slane %v566_v13, 1  ;;  %v3814_v24 = vld [vmem:[%s5060_s1 + $0x38] sm:$0xff]   ;;  %v740_v13 = vrot.slane %v4162_v58, 1  ;;  %v3828_v58 = vld [vmem:[%s5060_s1 + $0x20] sm:$0xff]  }
  0x2b   : > { %3583 = vmatprep.subr.bf16.mxu1 %v3788_v36  ;;  %3631 = vmatprep.subr.bf16.mxu0 %v3789_v44 }
  0x2d   : > { %1067 = vmatmul.mubr.bf16.vlgmr.msra.gmra.mxu0 %v3995_v12  ;;  %1163 = vmatmul.mubr.bf16.vlgmr.msra.gmra.mxu1 %v4004_v17 }
  0x2e   : > { %3584 = vmatpush3.bf16.msra.mxu1 %v3788_v36  ;;  %3632 = vmatpush3.bf16.msra.mxu0 %v3789_v44  ;;  %v688_v36 = vrot.slane %v686_v29, 1  ;;  %v4141_v44 = vsel %vm485_vm0, %v540_v31, %v544_v26  ;;  %v734_v26 = vrot.slane %v4100_v10, 1  ;;  %v575_v31 = vrot.slane %v573_v16, 1 }
  0x2f   : > { %3585 = vmatprep.subr.bf16.mxu1 %v3790_v49  ;;  %1074 = vmatprep.mubr.bf16.mxu0 %v4069_v56 }
  0x30   : > { %1170 = vmatprep.mubr.bf16.mxu1 %v4074_v57  ;;  %3633 = vmatprep.subr.bf16.mxu0 %v3797_v53  ;;  %v4145_v46 = vsel %vm485_vm0, %v684_v38, %v688_v36  ;;  %v3819_v36 = vld [vmem:[%s5060_s1 + $0x30] sm:$0xff]   ;;  %v736_v38 = vrot.slane %v4131_v37, 1  ;;  %v576_v48 = vor.u32 %v575_v31, %v571_v27  ;;  %v745_v31 = vrot.slane %v4216_v33, 1 }
  0x32   : > { %3586 = vmatpush3.bf16.msra.mxu1 %v3790_v49  ;;  %3634 = vmatpush3.bf16.msra.mxu0 %v3797_v53  ;;  %v3808_v49 = vld [vmem:[%s5060_s1 + $0x148] sm:$0xff]   ;;  %v4251_v60 = vsel %vm485_vm0, %v576_v48, %v580_v45  ;;  %v3833_v48 = vld [vmem:[%s3986_s20 + $0x80] ss:$0 sps:$4 sm:$0x11]  }
  0x33   : > { %3587 = vmatprep.subr.bf16.mxu1 %v3795_v62  ;;  %3635 = vmatprep.subr.bf16.mxu0 %v3809_v25  ;;  %v4159_v53 = vld [vmem:[%s3986_s20 + $0x48] sm:$0xff]  }
  0x34   : > { %v559_v0 = vshrl.u32 %v4159_v53, 16  ;;  %v561_v1 = vshll.u32 %v4159_v53, 16  ;;  %v739_v52 = vrot.slane %v4159_v53, 1 }
  0x35   : > { %1075 = vmatmul.mubr.bf16.gmra.mxu0 %v4022_v30  ;;  %1171 = vmatmul.mubr.bf16.gmra.mxu1 %v4034_v35 }
  0x36   : > { %3588 = vmatpush3.bf16.msra.mxu1 %v3795_v62  ;;  %1082 = vmatprep.mubr.bf16.mxu0 %v4103_v11  ;;  %v3810_v62 = vld [vmem:[%s5060_s1 + $0x140] sm:$0xff]   ;;  %v563_v12 = vrot.slane %v561_v1, 1 }
  0x37   : > { %3589 = vmatprep.subr.bf16.mxu1 %v3796_v5  ;;  %1178 = vmatprep.mubr.bf16.mxu1 %v4117_v22 }
  0x38   : > { %3636 = vmatpush3.bf16.msra.mxu0 %v3809_v25  ;;  %v564_v14 = vor.u32 %v563_v12, %v559_v0  ;;  %v733_v25 = vrot.slane %v4097_v8, 1  ;;  %v587_v0 = vrot.slane %v585_v40, 1  ;;  %v4256_v12 = vld [vmem:[%s3986_s20 + $0x6c] sm:$0xff]  }
  0x39   : > { %3637 = vmatprep.subr.bf16.mxu0 %v3815_v51 }
  0x3a   : > { %3590 = vmatpush3.bf16.msra.mxu1 %v3796_v5  ;;  %v727_v5 = vrot.slane %v4022_v30, 1  ;;  %v730_v30 = vrot.slane %v4063_v54, 1  ;;  %v4213_v29 = vsel %vm485_vm0, %v564_v14, %v568_v15  ;;  %v4241_v50 = vsel %vm720_vm1, %v733_v25, %v734_v26  ;;  %v3831_v14 = vld [vmem:[%s3986_s20 + $0x74] ss:$0 sps:$4 sm:$0x11]   ;;  %v3842_v25 = vld [vmem:[%s5060_s1 + $0x88] sm:$0xff]  }
  0x3b   : > { %3591 = vmatprep.subr.bf16.mxu1 %v3802_v23 }
  0x3c   : > { %3638 = vmatpush3.bf16.msra.mxu0 %v3815_v51  ;;  %v4219_v10 = vsel %vm720_vm1, %v730_v30, %v731_v34  ;;  %v4244_v51 = vsel %vm720_vm1, %v736_v38, %v737_v42  ;;  %v597_v30 = vshll.u32 %v4256_v12, 16  ;;  %v595_v34 = vshrl.u32 %v4256_v12, 16  ;;  %v3840_v38 = vld [vmem:[%s5060_s1 + $0x50] sm:$0xff]  }
  0x3d   : > { %1083 = vmatmul.mubr.bf16.gmra.mxu0 %v4063_v54  ;;  %1179 = vmatmul.mubr.bf16.gmra.mxu1 %v4080_v61 }
  0x3e   : > { %3592 = vmatpush3.bf16.msra.mxu1 %v3802_v23  ;;  %1090 = vmatprep.mubr.bf16.mxu0 %v4141_v44  ;;  %v4200_v23 = vsel %vm720_vm1, %v727_v5, %v728_v6  ;;  %v3827_v5 = vld [vmem:[%s5060_s1 + $0x60] sm:$0xff]   ;;  %v742_v6 = vrot.slane %v4179_v4, 1  ;;  %v599_v27 = vrot.slane %v597_v30, 1 }
  0x3f   : > { %3593 = vmatprep.subr.bf16.mxu1 %v3803_v43  ;;  %1186 = vmatprep.mubr.bf16.mxu1 %v4145_v46 }
  0x40   : > { %3639 = vmatprep.subr.bf16.mxu0 %v3824_v18 }
  0x41   : > { %3640 = vmatpush3.bf16.msra.mxu0 %v3824_v18  ;;  %v4278_v18 = vsel %vm720_vm1, %v739_v52, %v740_v13  ;;  %v3841_v52 = vld [vmem:[%s5060_s1 + $0x10] sm:$0xff]  }
  0x42   : > { %3594 = vmatpush3.bf16.msra.mxu1 %v3803_v43  ;;  %v3822_v43 = vld [vmem:[%s5060_s1 + $0x68] sm:$0xff]   ;;  %3641 = vmatprep.subr.bf16.mxu0 %v3829_v47 }
  0x43   : > { %3595 = vmatprep.subr.bf16.mxu1 %v3808_v49 }
  0x45   : > { %1091 = vmatmul.mubr.bf16.gmra.mxu0 %v4097_v8  ;;  %1187 = vmatmul.mubr.bf16.gmra.mxu1 %v4109_v20 }
  0x46   : > { %3596 = vmatpush3.bf16.msra.mxu1 %v3808_v49  ;;  %1098 = vmatprep.mubr.bf16.mxu0 %v4172_v2  ;;  %v4237_v49 = vld [vmem:[%s3986_s20 + $0x68] ss:$0 sps:$4 sm:$0x11]  }
  0x47   : > { %3597 = vmatprep.subr.bf16.mxu1 %v3810_v62  ;;  %3599 = vmatprep.mubr.bf16.mxu1 %v4176_v3  ;;  %v590_v1 = vshll.u32 %v4237_v49, 16  ;;  %v746_v42 = vrot.slane %v4237_v49, 1  ;;  %v3843_v49 = vld [vmem:[%s5060_s1 + $0x48] sm:$0xff]  }
  0x48   : > { %3642 = vmatpush3.bf16.msra.mxu0 %v3829_v47  ;;  %v749_v47 = vrot.slane %v3831_v14, 1 }
  0x49   : > { %v592_v16 = vrot.slane %v590_v1, 1  ;;  %3643 = vmatprep.subr.bf16.mxu0 %v3842_v25  ;;  %v3837_v1 = vld [vmem:[%s3986_s20 + $0x8c] ss:$0 sps:$4 sm:$0x11]   ;;  %v4319_v13 = vsel %vm720_vm1, %v745_v31, %v746_v42  ;;  %v4346_v31 = vld [vmem:[%s3986_s20 + $0x90] sm:$0xff]   ;;  %v3847_v42 = vld [vmem:[%s5060_s1] sm:$0xff]  }
  0x4a   : > { %3598 = vmatpush3.bf16.msra.mxu1 %v3810_v62  ;;  %v583_v62 = vshrl.u32 %v4216_v33, 16 }
  0x4b   : > { %3311 = vmatprep.subr.bf16.mxu1 %v3813_v7  ;;  %v743_v7 = vrot.slane %v4190_v9, 1  ;;  %v3834_v9 = vld [vmem:[%s5060_s1 + $0x58] sm:$0xff]  }
  0x4c   : > { %v588_v15 = vor.u32 %v587_v0, %v583_v62  ;;  %3644 = vmatpush3.bf16.msra.mxu0 %v3842_v25  ;;  %v3845_v62 = vld [vmem:[%s5060_s1 + $0x80] sm:$0xff]   ;;  %v755_v25 = vrot.slane %v3837_v1, 1 }
  0x4d   : > { %1099 = vmatmul.mubr.bf16.gmra.mxu0 %v4131_v37  ;;  %3600 = vmatmul.mubr.bf16.vlgmr.msra.gmra.mxu1 %v4200_v23 }
  0x4e   : > { %3312 = vmatpush3.bf16.msra.mxu1 %v3814_v24  ;;  %1106 = vmatprep.mubr.bf16.mxu0 %v4213_v29  ;;  %v602_v24 = vshll.u32 %v3831_v14, 16  ;;  %v4284_v26 = vsel %vm485_vm0, %v588_v15, %v592_v16  ;;  %v3846_v16 = vld [vmem:[%s5060_s1 + $0x40] sm:$0xff]  }
  0x4f   : > { %3603 = vmatprep.mubr.bf16.mxu1 %v4219_v10  ;;  %3313 = vmatprep.subr.bf16.mxu1 %v3818_v55  ;;  %v4287_v55 = vsel %vm720_vm1, %v742_v6, %v743_v7  ;;  %v614_v6 = vshll.u32 %v3833_v48, 16  ;;  %v4322_v7 = vld [vmem:[%s3986_s20 + $0x84] sm:$0xff]  }
  0x50   : > { %v604_v45 = vrot.slane %v602_v24, 1  ;;  %3645 = vmatprep.subr.bf16.mxu0 %v3845_v62  ;;  %v754_v24 = vrot.slane %v4322_v7, 1 }
  0x51   : > { %3646 = vmatpush3.bf16.msra.mxu0 %v3845_v62  ;;  %v757_v62 = vrot.slane %v4346_v31, 1 }
  0x52   : > { %3314 = vmatpush3.bf16.msra.mxu1 %v3819_v36  ;;  %v4294_v36 = vld [vmem:[%s3986_s20 + $0x78] sm:$0xff]  }
  0x53   : > { %3315 = vmatprep.subr.bf16.mxu1 %v3822_v43  ;;  %v748_v43 = vrot.slane %v4256_v12, 1  ;;  %v609_v40 = vshll.u32 %v4294_v36, 16  ;;  %v607_v0 = vshrl.u32 %v4294_v36, 16  ;;  %v751_v30 = vrot.slane %v4294_v36, 1 }
  0x55   : > { %1107 = vmatmul.mubr.bf16.gmra.mxu0 %v4159_v53  ;;  %3604 = vmatmul.mubr.bf16.gmra.mxu1 %v4241_v50  ;;  %v4331_v15 = vsel %vm720_vm1, %v748_v43, %v749_v47  ;;  %v3839_v43 = vld [vmem:[%s3986_s20 + $0x98] ss:$0 sps:$4 sm:$0x11]  }
  0x56   : > { %1114 = vmatprep.mubr.bf16.mxu0 %v4251_v60  ;;  %3607 = vmatprep.mubr.bf16.mxu1 %v4244_v51 }
  0x57   : > { %3316 = vmatpush3.bf16.msra.mxu1 %v3823_v59  ;;  %v600_v59 = vor.u32 %v599_v27, %v595_v34  ;;  %v616_v34 = vrot.slane %v614_v6, 1  ;;  %v3851_v27 = vld [vmem:[%s5060_s1 + $0x1f8] sm:$0xff]  }
  0x58   : > { %3317 = vmatprep.subr.bf16.mxu1 %v3827_v5  ;;  %v611_v5 = vrot.slane %v609_v40, 1  ;;  %3447 = vmatprep.subr.bf16.mxu0 %v3851_v27  ;;  %v3848_v27 = vld [vmem:[%s3986_s20] sm:$0xff]  }
  0x59   : > { %v4328_v14 = vsel %vm485_vm0, %v600_v59, %v604_v45  ;;  %v4356_v45 = vld [vmem:[%s5060_s1 + $0x238] sm:$0xff]  }
  0x5b   : > { %3318 = vmatpush3.bf16.msra.mxu1 %v3828_v58  ;;  %v3844_v58 = vld [vmem:[%s5060_s1 + $0x8] sm:$0xff]  }
  0x5c   : > { %3319 = vmatprep.subr.bf16.mxu1 %v3834_v9  ;;  %v752_v9 = vrot.slane %v3833_v48, 1  ;;  %v619_v48 = vshrl.u32 %v4322_v7, 16 }
  0x5d   : > { %1115 = vmatmul.mubr.bf16.gmra.mxu0 %v4179_v4  ;;  %3608 = vmatmul.mubr.bf16.gmra.mxu1 %v4278_v18 }
  0x5e   : > { %1122 = vmatprep.mubr.bf16.mxu0 %v4284_v26  ;;  %3611 = vmatprep.mubr.bf16.mxu1 %v4287_v55  ;;  %v4359_v47 = vsel %vm720_vm1, %v751_v30, %v752_v9  ;;  %v631_v9 = vshrl.u32 %v4346_v31, 16 }
  0x5f   : > { %3320 = vmatpush3.bf16.msra.mxu1 %v3835_v28  ;;  %v612_v28 = vor.u32 %v611_v5, %v607_v0  ;;  %v758_v0 = vrot.slane %v3839_v43, 1  ;;  %v760_v5 = vrot.slane %v4004_v17, 1 }
  0x60   : > { %3321 = vmatprep.subr.bf16.mxu1 %v3840_v38  ;;  %v621_v38 = vshll.u32 %v4322_v7, 16 }
  0x61   : > { %v4363_v40 = vsel %vm485_vm0, %v612_v28, %v616_v34  ;;  %v4378_v30 = vsel %vm720_vm1, %v757_v62, %v758_v0  ;;  %v638_v34 = vshll.u32 %v3839_v43, 16  ;;  %v764_v28 = vrot.slane %v4047_v41, 1 }
  0x62   : > { %v623_v59 = vrot.slane %v621_v38, 1  ;;  %v3849_v38 = vld [vmem:[%s3986_s20 + $0x8] ss:$0 sps:$4 sm:$0x11]   ;;  %v767_v43 = vrot.slane %v4086_v63, 1  ;;  %v487_v0 = vshrl.u32 %v3848_v27, 16 }
  0x63   : > { %3322 = vmatpush3.bf16.msra.mxu1 %v3841_v52  ;;  %v4366_v52 = vsel %vm720_vm1, %v754_v24, %v755_v25  ;;  %v770_v63 = vrot.slane %v4112_v21, 1  ;;  %v3853_v21 = vld [vmem:[%s5060_s1 + $0x1f0] sm:$0xff]  }
  0x64   : > { %3323 = vmatprep.subr.bf16.mxu1 %v3843_v49  ;;  %v626_v49 = vshll.u32 %v3837_v1, 16  ;;  %v761_v1 = vrot.slane %v4010_v19, 1  ;;  %v624_v6 = vor.u32 %v623_v59, %v619_v48  ;;  %v763_v19 = vrot.slane %v4034_v35, 1 }
  0x65   : > { %1123 = vmatmul.mubr.bf16.gmra.mxu0 %v4216_v33  ;;  %3612 = vmatmul.mubr.bf16.gmra.mxu1 %v4319_v13  ;;  %v640_v59 = vrot.slane %v638_v34, 1 }
  0x66   : > { %1130 = vmatprep.mubr.bf16.mxu0 %v4328_v14  ;;  %3615 = vmatprep.mubr.bf16.mxu1 %v4331_v15  ;;  %v4385_v25 = vsel %vm720_vm1, %v760_v5, %v761_v1  ;;  %v4398_v62 = vsel %vm720_vm1, %v763_v19, %v764_v28  ;;  %v494_v1 = vshll.u32 %v3849_v38, 16  ;;  %v3855_v28 = vld [vmem:[%s5060_s1 + $0x230] sm:$0xff]  }
  0x67   : > { %3324 = vmatpush3.bf16.msra.mxu1 %v3844_v58  ;;  %v628_v58 = vrot.slane %v626_v49, 1  ;;  %v489_v49 = vshll.u32 %v3848_v27, 16 }
  0x68   : > { %3325 = vmatprep.subr.bf16.mxu1 %v3846_v16  ;;  %v633_v16 = vshll.u32 %v4346_v31, 16 }
  0x69   : > { %v4382_v24 = vsel %vm485_vm0, %v624_v6, %v628_v58  ;;  %v491_v5 = vrot.slane %v489_v49, 1  ;;  %v496_v58 = vrot.slane %v494_v1, 1  ;;  %v3870_v49 = vld [vmem:[%s5060_s1 + $0x218] sm:$0xff]   ;;  %v3871_v1 = vld [vmem:[%s5060_s1 + $0x210] sm:$0xff]  }
  0x6a   : > { %v635_v17 = vrot.slane %v633_v16, 1  ;;  %v721_v16 = vrot.slane %v3848_v27, 1 }
  0x6b   : > { %3326 = vmatpush3.bf16.msra.mxu1 %v3847_v42  ;;  %v766_v42 = vrot.slane %v4080_v61, 1  ;;  %v769_v61 = vrot.slane %v4109_v20, 1  ;;  %v492_v6 = vor.u32 %v491_v5, %v487_v0  ;;  %v3852_v20 = vld [vmem:[%s5060_s1 + $0x1b8] sm:$0xff]   ;;  %v3863_v5 = vld [vmem:[%s5060_s1 + $0x1d0] sm:$0xff]  }
  0x6c   : > { %3679 = vmatprep.subr.bf16.mxu1 %v4356_v45  ;;  %v636_v48 = vor.u32 %v635_v17, %v631_v9  ;;  %v722_v9 = vrot.slane %v3849_v38, 1  ;;  %v3854_v38 = vld [vmem:[%s5060_s1 + $0x1b0] sm:$0xff]   ;;  %v3862_v0 = vld [vmem:[%s5060_s1 + $0x198] sm:$0xff]  }
  0x6d   : > { %1131 = vmatmul.mubr.bf16.gmra.mxu0 %v4256_v12  ;;  %3616 = vmatmul.mubr.bf16.gmra.mxu1 %v4359_v47  ;;  %v4404_v41 = vsel %vm720_vm1, %v766_v42, %v767_v43  ;;  %v4413_v34 = vsel %vm720_vm1, %v769_v61, %v770_v63  ;;  %v497_v17 = vsel %vm485_vm0, %v492_v6, %v496_v58  ;;  %v3856_v42 = vld [vmem:[%s5060_s1 + $0x1e8] sm:$0xff]   ;;  %v3877_v61 = vld [vmem:[%s3986_s20 + $0x18] sm:$0xff]   ;;  %v3864_v63 = vld [vmem:[%s5060_s1 + $0x190] sm:$0xff]  }
  0x6e   : > { %1138 = vmatprep.mubr.bf16.mxu0 %v4363_v40  ;;  %3619 = vmatprep.mubr.bf16.mxu1 %v4366_v52  ;;  %v4401_v35 = vsel %vm485_vm0, %v636_v48, %v640_v59  ;;  %v723_v19 = vsel %vm720_vm1, %v721_v16, %v722_v9  ;;  %v3876_v43 = vld [vmem:[%s3986_s20 + $0xc] sm:$0xff]   ;;  %v3859_v48 = vld [vmem:[%s5060_s1 + $0x1a0] sm:$0xff]   ;;  %v3861_v59 = vld [vmem:[%s5060_s1 + $0x1d8] sm:$0xff]  }
  0x6f   : > { %v3866_v6 = vld [vmem:[%s5060_s1 + $0x1c8] sm:$0xff]   ;;  %v3868_v9 = vld [vmem:[%s5060_s1 + $0x1c0] sm:$0xff]  }
  0x70   : > { %v3872_v58 = vld [vmem:[%s5060_s1 + $0x208] sm:$0xff]  }
  0x71   : > { %v3867_v16 = vld [vmem:[%s5060_s1 + $0x188] sm:$0xff]  }
  0x75   : > { %1139 = vmatmul.mubr.bf16.gmra.mxu0 %v4294_v36  ;;  %3620 = vmatmul.mubr.bf16.gmra.mxu1 %v4378_v30 }
  0x76   : > { %1146 = vmatprep.mubr.bf16.mxu0 %v4382_v24  ;;  %3623 = vmatprep.mubr.bf16.mxu1 %v4385_v25 }
  0x7d   : > { %1147 = vmatmul.mubr.bf16.gmra.mxu0 %v4322_v7  ;;  %3624 = vmatmul.mubr.bf16.gmra.mxu1 %v4398_v62 }
  0x7e   : > { %1154 = vmatprep.mubr.bf16.mxu0 %v4401_v35  ;;  %3627 = vmatprep.mubr.bf16.mxu1 %v4404_v41 }
  0x85   : > { %1155 = vmatmul.mubr.bf16.gmra.mxu0 %v4346_v31  ;;  %3628 = vmatmul.mubr.bf16.gmra.mxu1 %v4413_v34 }
  0x86   : > { %1532 = vmatprep.mubr.bf16.mxu1 %v497_v17  ;;  %3647 = vmatprep.mubr.bf16.mxu0 %v723_v19  ;;  %v3873_v17 = vld [vmem:[%s5060_s1 + $0x200] sm:$0xff]  }
  0x87   : > { %v3869_v19 = vld [vmem:[%s5060_s1 + $0x180] sm:$0xff]  }
  0x8d   : > { %1533 = vmatmul.mubr.bf16.vlgmr.msra.gmra.mxu1 %v3848_v27  ;;  %3648 = vmatmul.mubr.bf16.vlgmr.msra.gmra.mxu0 %v4176_v3  ;;  %v3860_v3 = vld [vmem:[%s5060_s1 + $0x228] sm:$0xff]   ;;  %v3865_v27 = vld [vmem:[%s5060_s1 + $0x220] sm:$0xff]  }
  0x8e   : > { %3680 = vmatpush3.bf16.msra.mxu1 %v4356_v45  ;;  %3448 = vmatpush3.bf16.msra.mxu0 %v3852_v20  ;;  %v3857_v45 = vld [vmem:[%s5060_s1 + $0x1a8] sm:$0xff]  }
  0x8f   : > { %1540 = vmatprep.mubr.bf16.mxu1 %v4028_v32  ;;  %3651 = vmatprep.mubr.bf16.mxu0 %v4200_v23  ;;  %v3858_v32 = vld [vmem:[%s5060_s1 + $0x1e0] sm:$0xff]  }
  0x90   : > { %3449 = vmatprep.subr.bf16.mxu0 %v3853_v21  ;;  %3681 = vmatprep.subr.bf16.mxu1 %v3855_v28 }
  0x92   : > { %3450 = vmatpush3.bf16.msra.mxu0 %v3854_v38  ;;  %3682 = vmatpush3.bf16.msra.mxu1 %v3855_v28 }
  0x93   : > { %3451 = vmatprep.subr.bf16.mxu0 %v3856_v42  ;;  %3683 = vmatprep.subr.bf16.mxu1 %v3860_v3 }
  0x95   : > { %1541 = vmatmul.mubr.bf16.gmra.mxu1 %v3876_v43  ;;  %3652 = vmatmul.mubr.bf16.gmra.mxu0 %v4219_v10 }
  0x96   : > { %1548 = vmatprep.mubr.bf16.mxu1 %v4069_v56  ;;  %3655 = vmatprep.mubr.bf16.mxu0 %v4241_v50 }
  0x97   : > { %3452 = vmatpush3.bf16.msra.mxu0 %v3857_v45  ;;  %3684 = vmatpush3.bf16.msra.mxu1 %v3860_v3  ;;  %v4545_v45 = vld [vmem:[%s3986_s20 + $0x9c] sm:$0xff]  }
  0x98   : > { %3453 = vmatprep.subr.bf16.mxu0 %v3858_v32  ;;  %3685 = vmatprep.subr.bf16.mxu1 %v3865_v27 }
  0x9b   : > { %3454 = vmatpush3.bf16.msra.mxu0 %v3859_v48  ;;  %3686 = vmatpush3.bf16.msra.mxu1 %v3865_v27 }
  0x9c   : > { %3455 = vmatprep.subr.bf16.mxu0 %v3861_v59  ;;  %3687 = vmatprep.subr.bf16.mxu1 %v3870_v49 }
  0x9d   : > { %1549 = vmatmul.mubr.bf16.gmra.mxu1 %v3877_v61  ;;  %3656 = vmatmul.mubr.bf16.gmra.mxu0 %v4244_v51 }
  0x9e   : > { %1556 = vmatprep.mubr.bf16.mxu1 %v4103_v11  ;;  %3659 = vmatprep.mubr.bf16.mxu0 %v4278_v18 }
  0x9f   : > { %3456 = vmatpush3.bf16.msra.mxu0 %v3862_v0  ;;  %3688 = vmatpush3.bf16.msra.mxu1 %v3870_v49 }
  0xa0   : > { %3457 = vmatprep.subr.bf16.mxu0 %v3863_v5  ;;  %3689 = vmatprep.subr.bf16.mxu1 %v3871_v1 }
  0xa3   : > { %3458 = vmatpush3.bf16.msra.mxu0 %v3864_v63  ;;  %3690 = vmatpush3.bf16.msra.mxu1 %v3871_v1 }
  0xa4   : > { %3459 = vmatprep.subr.bf16.mxu0 %v3866_v6  ;;  %3691 = vmatprep.subr.bf16.mxu1 %v3872_v58  ;;  %v4556_v6 = vld [vmem:[%s3986_s20 + $0xa8] sm:$0xff]  }
  0xa5   : > { %1557 = vmatmul.mubr.bf16.gmra.mxu1 %v4063_v54  ;;  %3660 = vmatmul.mubr.bf16.gmra.mxu0 %v4287_v55  ;;  %v3878_v54 = vld [vmem:[%s3986_s20 + $0x24] sm:$0xff]  }
  0xa6   : > { %1564 = vmatprep.mubr.bf16.mxu1 %v4141_v44  ;;  %3663 = vmatprep.mubr.bf16.mxu0 %v4319_v13 }
  0xa7   : > { %3460 = vmatpush3.bf16.msra.mxu0 %v3867_v16  ;;  %3692 = vmatpush3.bf16.msra.mxu1 %v3872_v58 }
  0xa8   : > { %3461 = vmatprep.subr.bf16.mxu0 %v3868_v9  ;;  %3693 = vmatprep.subr.bf16.mxu1 %v3873_v17 }
  0xab   : > { %3462 = vmatpush3.bf16.msra.mxu0 %v3869_v19  ;;  %3694 = vmatpush3.bf16.msra.mxu1 %v3873_v17 }
  0xad   : > { %1565 = vmatmul.mubr.bf16.gmra.mxu1 %v4097_v8  ;;  %3664 = vmatmul.mubr.bf16.gmra.mxu0 %v4331_v15 }
  0xae   : > { %1572 = vmatprep.mubr.bf16.mxu1 %v4172_v2  ;;  %3667 = vmatprep.mubr.bf16.mxu0 %v4359_v47 }
  0xb5   : > { %1573 = vmatmul.mubr.bf16.gmra.mxu1 %v4131_v37  ;;  %3668 = vmatmul.mubr.bf16.gmra.mxu0 %v4366_v52 }
  0xb6   : > { %1580 = vmatprep.mubr.bf16.mxu1 %v4213_v29  ;;  %3671 = vmatprep.mubr.bf16.mxu0 %v4378_v30 }
  0xbd   : > { %1581 = vmatmul.mubr.bf16.gmra.mxu1 %v4159_v53  ;;  %3672 = vmatmul.mubr.bf16.gmra.mxu0 %v4385_v25 }
  0xbe   : > { %1588 = vmatprep.mubr.bf16.mxu1 %v4251_v60  ;;  %3675 = vmatprep.mubr.bf16.mxu0 %v4398_v62 }
  0xc5   : > { %1589 = vmatmul.mubr.bf16.gmra.mxu1 %v4179_v4  ;;  %3676 = vmatmul.mubr.bf16.gmra.mxu0 %v4404_v41 }
  0xc6   : > { %1596 = vmatprep.mubr.bf16.mxu1 %v4284_v26  ;;  %2047 = vmatprep.mubr.bf16.mxu0 %v4069_v56 }
  0xcd   : > { %1597 = vmatmul.mubr.bf16.gmra.mxu1 %v4216_v33  ;;  %2048 = vmatmul.mubr.bf16.vlgmr.msra.gmra.mxu0 %v3877_v61 }
  0xce   : > { %1604 = vmatprep.mubr.bf16.mxu1 %v4328_v14  ;;  %2055 = vmatprep.mubr.bf16.mxu0 %v4103_v11 }
  0xd5   : > { %1605 = vmatmul.mubr.bf16.gmra.mxu1 %v4256_v12  ;;  %2056 = vmatmul.mubr.bf16.gmra.mxu0 %v3878_v54 }
  0xd6   : > { %1612 = vmatprep.mubr.bf16.mxu1 %v4363_v40  ;;  %2063 = vmatprep.mubr.bf16.mxu0 %v4141_v44 }
  0xdd   : > { %1613 = vmatmul.mubr.bf16.gmra.mxu1 %v4294_v36  ;;  %2064 = vmatmul.mubr.bf16.gmra.mxu0 %v4097_v8 }
  0xde   : > { %1620 = vmatprep.mubr.bf16.mxu1 %v4382_v24  ;;  %2071 = vmatprep.mubr.bf16.mxu0 %v4172_v2 }
  0xe5   : > { %1621 = vmatmul.mubr.bf16.gmra.mxu1 %v4322_v7  ;;  %2072 = vmatmul.mubr.bf16.gmra.mxu0 %v4131_v37 }
  0xe6   : > { %1628 = vmatprep.mubr.bf16.mxu1 %v4401_v35  ;;  %2079 = vmatprep.mubr.bf16.mxu0 %v4213_v29 }
  0xed   : > { %v3191_v56 = vpop.f32.mrf.mxu0  ;;  %v3263_v11 = vpop.f32.mrf.mxu1  ;;  %1629 = vmatmul.mubr.bf16.gmra.mxu1 %v4346_v31  ;;  %2080 = vmatmul.mubr.bf16.gmra.mxu0 %v4159_v53 }
  0xee   : > { %1636 = vmatprep.mubr.bf16.mxu1 %v4043_v39  ;;  %2087 = vmatprep.mubr.bf16.mxu0 %v4251_v60 }
  0xef   : > { %v3192_v8 = vpop.f32.mrf.mxu0  ;;  %v3264_v44 = vpop.f32.mrf.mxu1 }
  0xf0   : > { %v4536_v2 = vadd.f32 %v3192_v8, %v3191_v56  ;;  %v4538_v37 = vadd.f32 %v3264_v44, %v3263_v11 }
  0xf1   : > { %v3194_v20 = vpop.f32.mrf.mxu0  ;;  %v3266_v21 = vpop.f32.mrf.mxu1 }
  0xf3   : > { %v3195_v29 = vpop.f32.mrf.mxu0  ;;  %v3267_v28 = vpop.f32.mrf.mxu1 }
  0xf4   : > { %v4540_v38 = vadd.f32 %v3195_v29, %v3194_v20  ;;  %v4542_v42 = vadd.f32 %v3267_v28, %v3266_v21  ;;  %v4567_v20 = vld [vmem:[%s3986_s20 + $0xb4] sm:$0xff]  }
  0xf5   : > { %v3197_v3 = vpop.f32.mrf.mxu0  ;;  %v3269_v53 = vpop.f32.mrf.mxu1  ;;  %1637 = vmatmul.mubr.bf16.gmra.mxu1 %v4545_v45  ;;  %2088 = vmatmul.mubr.bf16.gmra.mxu0 %v4179_v4 }
  0xf6   : > { %1644 = vmatprep.mubr.bf16.mxu1 %v4074_v57  ;;  %2095 = vmatprep.mubr.bf16.mxu0 %v4284_v26 }
  0xf7   : > { %v3198_v60 = vpop.f32.mrf.mxu0  ;;  %v3270_v32 = vpop.f32.mrf.mxu1 }
  0xf8   : > { %v3199_v27 = vadd.f32 %v3198_v60, %v3197_v3  ;;  %v4551_v43 = vadd.f32 %v3270_v32, %v3269_v53 }
  0xf9   : > { %v3200_v48 = vpop.f32.mrf.mxu0  ;;  %v3272_v59 = vpop.f32.mrf.mxu1 }
  0xfb   : > { %v3201_v49 = vpop.f32.mrf.mxu0  ;;  %v3273_v0 = vpop.f32.mrf.mxu1 }
  0xfc   : > { %v3202_v5 = vadd.f32 %v3201_v49, %v3200_v48  ;;  %v4553_v1 = vadd.f32 %v3273_v0, %v3272_v59 }
  0xfd   : > { %v3203_v61 = vpop.f32.mrf.mxu0  ;;  %v3275_v63 = vpop.f32.mrf.mxu1  ;;  %1645 = vmatmul.mubr.bf16.gmra.mxu1 %v4556_v6  ;;  %2096 = vmatmul.mubr.bf16.gmra.mxu0 %v4216_v33 }
  0xfe   : > { %1652 = vmatprep.mubr.bf16.mxu1 %v4117_v22  ;;  %2103 = vmatprep.mubr.bf16.mxu0 %v4328_v14 }
  0xff   : > { %v3204_v4 = vpop.f32.mrf.mxu0  ;;  %v3276_v26 = vpop.f32.mrf.mxu1 }
 0x100   : > { %v3205_v58 = vadd.f32 %v3204_v4, %v3203_v61  ;;  %v4562_v16 = vadd.f32 %v3276_v26, %v3275_v63 }
 0x101   : > { %v3206_v9 = vpop.f32.mrf.mxu0  ;;  %v3278_v17 = vpop.f32.mrf.mxu1 }
 0x103   : > { %v3207_v19 = vpop.f32.mrf.mxu0  ;;  %v3279_v54 = vpop.f32.mrf.mxu1 }
 0x104   : > { %v3208_v56 = vadd.f32 %v3207_v19, %v3206_v9  ;;  %v4564_v11 = vadd.f32 %v3279_v54, %v3278_v17 }
 0x105   : > { %v3209_v8 = vpop.f32.mrf.mxu0  ;;  %v3281_v44 = vpop.f32.mrf.mxu1  ;;  %1653 = vmatmul.mubr.bf16.gmra.mxu1 %v4567_v20  ;;  %2104 = vmatmul.mubr.bf16.gmra.mxu0 %v4256_v12 }
 0x106   : > { %2111 = vmatprep.mubr.bf16.mxu0 %v4363_v40  ;;  %3695 = vmatprep.mubr.bf16.mxu1 %v4200_v23 }
 0x107   : > { %v3210_v33 = vpop.f32.mrf.mxu0  ;;  %v3282_v14 = vpop.f32.mrf.mxu1 }
 0x108   : > { %v3211_v21 = vadd.f32 %v3210_v33, %v3209_v8  ;;  %v4573_v29 = vadd.f32 %v3282_v14, %v3281_v44 }
 0x109   : > { %v3212_v28 = vpop.f32.mrf.mxu0  ;;  %v3284_v3 = vpop.f32.mrf.mxu1 }
 0x10b   : > { %v3213_v53 = vpop.f32.mrf.mxu0  ;;  %v3285_v60 = vpop.f32.mrf.mxu1 }
 0x10c   : > { %v3214_v32 = vadd.f32 %v3213_v53, %v3212_v28  ;;  %v4575_v48 = vadd.f32 %v3285_v60, %v3284_v3 }
 0x10d   : > { %v3215_v59 = vpop.f32.mrf.mxu0  ;;  %v3601_v49 = vpop.f32.mrf.mxu1  ;;  %2112 = vmatmul.mubr.bf16.gmra.mxu0 %v4294_v36  ;;  %3696 = vmatmul.mubr.bf16.vlgmr.msra.gmra.mxu1 %v4219_v10 }
 0x10e   : > { %v4579_v12 = vadd.f32 %v3601_v49, %v3199_v27  ;;  %2119 = vmatprep.mubr.bf16.mxu0 %v4382_v24  ;;  %3699 = vmatprep.mubr.bf16.mxu1 %v4241_v50 }
 0x10f   : > { %v3216_v23 = vpop.f32.mrf.mxu0  ;;  %v1229_v40 = vpop.f32.mrf.mxu1 }
 0x110   : > { %v3217_v0 = vadd.f32 %v3216_v23, %v3215_v59  ;;  %v4584_v61 = vadd.f32 %v4536_v2, %v1229_v40 }
 0x111   : > { %v3218_v63 = vpop.f32.mrf.mxu0  ;;  %v3602_v4 = vpop.f32.mrf.mxu1 }
 0x112   : > { %v4586_v26 = vadd.f32 %v3602_v4, %v3202_v5 }
 0x113   : > { %v3219_v9 = vpop.f32.mrf.mxu0  ;;  %v1232_v36 = vpop.f32.mrf.mxu1 }
 0x114   : > { %v3220_v17 = vadd.f32 %v3219_v9, %v3218_v63  ;;  %v4589_v10 = vadd.f32 %v4540_v38, %v1232_v36 }
 0x115   : > { %v3221_v27 = vpop.f32.mrf.mxu0  ;;  %v3605_v24 = vpop.f32.mrf.mxu1  ;;  %2120 = vmatmul.mubr.bf16.gmra.mxu0 %v4322_v7  ;;  %3700 = vmatmul.mubr.bf16.gmra.mxu1 %v4244_v51 }
 0x116   : > { %v4593_v50 = vadd.f32 %v3605_v24, %v3211_v21  ;;  %2127 = vmatprep.mubr.bf16.mxu0 %v4401_v35  ;;  %3703 = vmatprep.mubr.bf16.mxu1 %v4278_v18  ;;  %v4624_v24 = vld [vmem:[%s3986_s20 + $0xcc] sm:$0xff]  }
 0x117   : > { %v3222_v2 = vpop.f32.mrf.mxu0  ;;  %v1245_v5 = vpop.f32.mrf.mxu1 }
 0x118   : > { %v3223_v19 = vadd.f32 %v3222_v2, %v3221_v27  ;;  %v4597_v54 = vadd.f32 %v3205_v58, %v1245_v5 }
 0x119   : > { %v3224_v8 = vpop.f32.mrf.mxu0  ;;  %v3606_v38 = vpop.f32.mrf.mxu1 }
 0x11a   : > { %v4599_v44 = vadd.f32 %v3606_v38, %v3214_v32  ;;  %v693_v38 = vshll.u32 %v4624_v24, 16 }
 0x11b   : > { %v3225_v33 = vpop.f32.mrf.mxu0  ;;  %v1248_v14 = vpop.f32.mrf.mxu1 }
 0x11c   : > { %v3226_v7 = vadd.f32 %v3225_v33, %v3224_v8  ;;  %v4601_v28 = vadd.f32 %v3208_v56, %v1248_v14  ;;  %v3875_v8 = vld [vmem:[%s3986_s20 + $0xd4] ss:$0 sps:$4 sm:$0x11]  }
 0x11d   : > { %v3227_v51 = vpop.f32.mrf.mxu0  ;;  %v3609_v21 = vpop.f32.mrf.mxu1  ;;  %2128 = vmatmul.mubr.bf16.gmra.mxu0 %v4346_v31  ;;  %3704 = vmatmul.mubr.bf16.gmra.mxu1 %v4287_v55 }
 0x11e   : > { %v4605_v18 = vadd.f32 %v3609_v21, %v3223_v19  ;;  %2135 = vmatprep.mubr.bf16.mxu0 %v4043_v39  ;;  %3707 = vmatprep.mubr.bf16.mxu1 %v4319_v13 }
 0x11f   : > { %v3228_v35 = vpop.f32.mrf.mxu0  ;;  %v1261_v58 = vpop.f32.mrf.mxu1 }
 0x120   : > { %v3229_v3 = vadd.f32 %v3228_v35, %v3227_v51  ;;  %v4609_v53 = vadd.f32 %v3217_v0, %v1261_v58  ;;  %v695_v35 = vrot.slane %v693_v38, 1  ;;  %v698_v58 = vshll.u32 %v3875_v8, 16 }
 0x121   : > { %v3230_v60 = vpop.f32.mrf.mxu0  ;;  %v3610_v56 = vpop.f32.mrf.mxu1 }
 0x122   : > { %v4611_v32 = vadd.f32 %v3610_v56, %v3226_v7 }
 0x123   : > { %v3231_v59 = vpop.f32.mrf.mxu0  ;;  %v1264_v49 = vpop.f32.mrf.mxu1 }
 0x124   : > { %v3232_v31 = vadd.f32 %v3231_v59, %v3230_v60  ;;  %v4613_v23 = vadd.f32 %v3220_v17, %v1264_v49 }
 0x125   : > { %v3233_v55 = vpop.f32.mrf.mxu0  ;;  %v3613_v40 = vpop.f32.mrf.mxu1  ;;  %2136 = vmatmul.mubr.bf16.gmra.mxu0 %v4545_v45  ;;  %3708 = vmatmul.mubr.bf16.gmra.mxu1 %v4331_v15 }
 0x126   : > { %2143 = vmatprep.mubr.bf16.mxu0 %v4074_v57  ;;  %3711 = vmatprep.mubr.bf16.mxu1 %v4359_v47 }
 0x127   : > { %v3234_v39 = vpop.f32.mrf.mxu0  ;;  %v1277_v13 = vpop.f32.mrf.mxu1 }
 0x128   : > { %v3235_v0 = vadd.f32 %v3234_v39, %v3233_v55  ;;  %v4619_v63 = vadd.f32 %v3229_v3, %v1277_v13 }
 0x129   : > { %v3236_v4 = vpop.f32.mrf.mxu0  ;;  %v3614_v9 = vpop.f32.mrf.mxu1 }
 0x12a   : > { %v4621_v36 = vadd.f32 %v3613_v40, %v3235_v0 }
 0x12b   : > { %v3237_v17 = vpop.f32.mrf.mxu0  ;;  %v1280_v27 = vpop.f32.mrf.mxu1 }
 0x12c   : > { %v3238_v45 = vadd.f32 %v3237_v17, %v3236_v4  ;;  %v4626_v15 = vadd.f32 %v3232_v31, %v1280_v27  ;;  %v700_v31 = vrot.slane %v698_v58, 1 }
 0x12d   : > { %v3239_v57 = vpop.f32.mrf.mxu0  ;;  %v3617_v2 = vpop.f32.mrf.mxu1  ;;  %2144 = vmatmul.mubr.bf16.gmra.mxu0 %v4556_v6  ;;  %3712 = vmatmul.mubr.bf16.gmra.mxu1 %v4366_v52  ;;  %v691_v52 = vshrl.u32 %v4624_v24, 16 }
 0x12e   : > { %v4630_v47 = vadd.f32 %v3614_v9, %v3238_v45  ;;  %2151 = vmatprep.mubr.bf16.mxu0 %v4117_v22  ;;  %3715 = vmatprep.mubr.bf16.mxu1 %v4378_v30  ;;  %v772_v45 = vrot.slane %v4624_v24, 1 }
 0x12f   : > { %v3240_v5 = vpop.f32.mrf.mxu0  ;;  %v1293_v19 = vpop.f32.mrf.mxu1  ;;  %v696_v49 = vor.u32 %v695_v35, %v691_v52 }
 0x130   : > { %v3241_v33 = vadd.f32 %v3240_v5, %v3239_v57  ;;  %v773_v57 = vrot.slane %v3875_v8, 1 }
 0x131   : > { %v3242_v14 = vpop.f32.mrf.mxu0  ;;  %v3618_v7 = vpop.f32.mrf.mxu1 }
 0x132   : > { %v4636_v51 = vadd.f32 %v3241_v33, %v1293_v19 }
 0x133   : > { %v3243_v21 = vpop.f32.mrf.mxu0  ;;  %v1296_v6 = vpop.f32.mrf.mxu1 }
 0x134   : > { %v3244_v3 = vadd.f32 %v3243_v21, %v3242_v14 }
 0x135   : > { %v3245_v22 = vpop.f32.mrf.mxu0  ;;  %v3621_v60 = vpop.f32.mrf.mxu1  ;;  %2152 = vmatmul.mubr.bf16.gmra.mxu0 %v4567_v20  ;;  %3716 = vmatmul.mubr.bf16.gmra.mxu1 %v4385_v25  ;;  %v701_v25 = vsel %vm485_vm0, %v696_v49, %v700_v31 }
 0x136   : > { %v4641_v30 = vadd.f32 %v3244_v3, %v1296_v6  ;;  %2159 = vmatprep.mubr.bf16.mxu0 %v4145_v46  ;;  %3719 = vmatprep.mubr.bf16.mxu1 %v4398_v62  ;;  %v3882_v46 = vld [vmem:[%s3986_s20 + $0xc0] sm:$0xff]   ;;  %s3047_s20 = sshll.u32 %s5099_s15, 7 }
 0x137   : > { %v3246_v56 = vpop.f32.mrf.mxu0  ;;  %v1309_v59 = vpop.f32.mrf.mxu1  ;;  %s4920_s21 = scalar_lea.vmem %s5061_s2, %s3047_s20 }
 0x138   : > { %v3247_v55 = vadd.f32 %v3246_v56, %v3245_v22 }
 0x139   : > { %v3248_v40 = vpop.f32.mrf.mxu0  ;;  %v3622_v39 = vpop.f32.mrf.mxu1 }
 0x13a   : > { %v4645_v13 = vadd.f32 %v3617_v2, %v3247_v55 }
 0x13b   : > { %v3249_v0 = vpop.f32.mrf.mxu0  ;;  %v1312_v20 = vpop.f32.mrf.mxu1 }
 0x13c   : > { %v3250_v4 = vadd.f32 %v3249_v0, %v3248_v40 }
 0x13d   : > { %v3251_v9 = vpop.f32.mrf.mxu0  ;;  %v3625_v17 = vpop.f32.mrf.mxu1  ;;  %2160 = vmatmul.mubr.bf16.gmra.mxu0 %v3882_v46  ;;  %3720 = vmatmul.mubr.bf16.gmra.mxu1 %v4404_v41 }
 0x13e   : > { %v4650_v62 = vadd.f32 %v3618_v7, %v3250_v4  ;;  %v4653_v27 = vadd.f32 %v3625_v17, %v4551_v43  ;;  %2167 = vmatprep.mubr.bf16.mxu0 %v701_v25  ;;  %3723 = vmatprep.mubr.bf16.mxu1 %v4413_v34  ;;  %v774_v43 = vsel %vm720_vm1, %v772_v45, %v773_v57 }
 0x13f   : > { %v3252_v2 = vpop.f32.mrf.mxu0  ;;  %v1325_v5 = vpop.f32.mrf.mxu1 }
 0x140   : > { %v3253_v19 = vadd.f32 %v3252_v2, %v3251_v9  ;;  %v4658_v38 = vadd.f32 %v4538_v37, %v1325_v5 }
 0x141   : > { %v3254_v33 = vpop.f32.mrf.mxu0  ;;  %v3626_v14 = vpop.f32.mrf.mxu1 }
 0x142   : > { %v4660_v41 = vadd.f32 %v3253_v19, %v1309_v59  ;;  %v4663_v7 = vadd.f32 %v3626_v14, %v4553_v1 }
 0x143   : > { %v3255_v21 = vpop.f32.mrf.mxu0  ;;  %v1328_v34 = vpop.f32.mrf.mxu1 }
 0x144   : > { %v3256_v6 = vadd.f32 %v3255_v21, %v3254_v33  ;;  %v4667_v8 = vadd.f32 %v4542_v42, %v1328_v34 }
 0x145   : > { %v3257_v52 = vpop.f32.mrf.mxu0  ;;  %v3629_v35 = vpop.f32.mrf.mxu1  ;;  %2168 = vmatmul.mubr.bf16.gmra.mxu0 %v4624_v24  ;;  %3724 = vmatmul.mubr.bf16.gmra.mxu1 %v774_v43 }
 0x146   : > { %v4670_v37 = vadd.f32 %v3256_v6, %v1312_v20  ;;  %v4673_v58 = vadd.f32 %v3629_v35, %v4573_v29 }
 0x147   : > { %v3258_v1 = vpop.f32.mrf.mxu0  ;;  %v1341_v3 = vpop.f32.mrf.mxu1 }
 0x148   : > { %v3259_v22 = vadd.f32 %v3258_v1, %v3257_v52  ;;  %v4676_v56 = vadd.f32 %v4562_v16, %v1341_v3 }
 0x149   : > { %v3260_v59 = vpop.f32.mrf.mxu0  ;;  %v3630_v49 = vpop.f32.mrf.mxu1 }
 0x14a   : > { %v4678_v42 = vadd.f32 %v3621_v60, %v3259_v22  ;;  %v4681_v31 = vadd.f32 %v3630_v49, %v4575_v48 }
 0x14b   : > { %v3261_v24 = vpop.f32.mrf.mxu0  ;;  %v1344_v55 = vpop.f32.mrf.mxu1 }
 0x14c   : > { %v3262_v40 = vadd.f32 %v3261_v24, %v3260_v59  ;;  %v4684_v0 = vadd.f32 %v4564_v11, %v1344_v55 }
 0x14d   : > { %v3327_v29 = vpop.f32.mrf.mxu1  ;;  %v3649_v20 = vpop.f32.mrf.mxu0 }
 0x14e   : > { %v4686_v25 = vadd.f32 %v3622_v39, %v3262_v40 }
 0x14f   : > { %v3328_v4 = vpop.f32.mrf.mxu1  ;;  %v1695_v16 = vpop.f32.mrf.mxu0 }
 0x150   : > { %v3329_v9 = vadd.f32 %v3328_v4, %v3327_v29 }
 0x151   : > { %v3330_v17 = vpop.f32.mrf.mxu1  ;;  %v3650_v46 = vpop.f32.mrf.mxu0 }
 0x152   : > { %v1535_v60 = vadd.f32 %v3329_v9, %v4584_v61 }
 0x153   : > { %v3331_v45 = vpop.f32.mrf.mxu1  ;;  %v1698_v48 = vpop.f32.mrf.mxu0 }
 0x154   : > { %v4689_v57 = vadd.f32 %v1695_v16, %v1535_v60  ;;  %v3332_v2 = vadd.f32 %v3331_v45, %v3330_v17 }
 0x155   : > { %v3333_v5 = vpop.f32.mrf.mxu1  ;;  %v3653_v19 = vpop.f32.mrf.mxu0 }
 0x156   : > { %v1538_v11 = vadd.f32 %v3332_v2, %v4589_v10 }
 0x157   : > { %v3334_v33 = vpop.f32.mrf.mxu1  ;;  %v1711_v14 = vpop.f32.mrf.mxu0 }
 0x158   : > { %v4692_v39 = vadd.f32 %v1698_v48, %v1538_v11  ;;  %v3335_v43 = vadd.f32 %v3334_v33, %v3333_v5 }
 0x159   : > { %v3336_v21 = vpop.f32.mrf.mxu1  ;;  %v3654_v34 = vpop.f32.mrf.mxu0 }
 0x15a   : > { %v1543_v6 = vadd.f32 %v3335_v43, %v4579_v12 }
 0x15b   : > { %v3337_v52 = vpop.f32.mrf.mxu1  ;;  %v1714_v61 = vpop.f32.mrf.mxu0 }
 0x15c   : > { %v3338_v35 = vadd.f32 %v3337_v52, %v3336_v21  ;;  %v4695_v1 = vadd.f32 %v3649_v20, %v1543_v6 }
 0x15d   : > { %v3339_v3 = vpop.f32.mrf.mxu1  ;;  %v3657_v22 = vpop.f32.mrf.mxu0 }
 0x15e   : > { %v1546_v59 = vadd.f32 %v3338_v35, %v4586_v26 }
 0x15f   : > { %v3340_v49 = vpop.f32.mrf.mxu1  ;;  %v1727_v10 = vpop.f32.mrf.mxu0 }
 0x160   : > { %v3341_v24 = vadd.f32 %v3340_v49, %v3339_v3  ;;  %v4698_v55 = vadd.f32 %v3650_v46, %v1546_v59 }
 0x161   : > { %v3342_v40 = vpop.f32.mrf.mxu1  ;;  %v3658_v29 = vpop.f32.mrf.mxu0 }
 0x162   : > { %v1551_v4 = vadd.f32 %v3341_v24, %v4597_v54 }
 0x163   : > { %v3343_v16 = vpop.f32.mrf.mxu1  ;;  %v1730_v12 = vpop.f32.mrf.mxu0 }
 0x164   : > { %v3344_v9 = vadd.f32 %v3343_v16, %v3342_v40  ;;  %v4701_v17 = vadd.f32 %v1711_v14, %v1551_v4 }
 0x165   : > { %v3345_v20 = vpop.f32.mrf.mxu1  ;;  %v4703_v60 = vpop.f32.mrf.mxu0 }
 0x166   : > { %v1554_v45 = vadd.f32 %v3344_v9, %v4601_v28 }
 0x167   : > { %v3346_v26 = vpop.f32.mrf.mxu1  ;;  %v1743_v48 = vpop.f32.mrf.mxu0 }
 0x168   : > { %v3347_v2 = vadd.f32 %v3346_v26, %v3345_v20  ;;  %v4706_v5 = vadd.f32 %v1714_v61, %v1554_v45 }
 0x169   : > { %v3348_v46 = vpop.f32.mrf.mxu1  ;;  %v4708_v11 = vpop.f32.mrf.mxu0 }
 0x16a   : > { %v1559_v54 = vadd.f32 %v3347_v2, %v4593_v50 }
 0x16b   : > { %v3349_v33 = vpop.f32.mrf.mxu1  ;;  %v1746_v43 = vpop.f32.mrf.mxu0 }
 0x16c   : > { %v3350_v21 = vadd.f32 %v3349_v33, %v3348_v46  ;;  %v4711_v14 = vadd.f32 %v3653_v19, %v1559_v54 }
 0x16d   : > { %v3351_v6 = vpop.f32.mrf.mxu1  ;;  %v4713_v52 = vpop.f32.mrf.mxu0 }
 0x16e   : > { %v1562_v28 = vadd.f32 %v3350_v21, %v4599_v44 }
 0x16f   : > { %v3352_v35 = vpop.f32.mrf.mxu1  ;;  %v4716_v3 = vpop.f32.mrf.mxu0 }
 0x170   : > { %v3353_v61 = vadd.f32 %v3352_v35, %v3351_v6  ;;  %v4718_v59 = vadd.f32 %v3654_v34, %v1562_v28 }
 0x171   : > { %v3354_v49 = vpop.f32.mrf.mxu1  ;;  %v4720_v24 = vpop.f32.mrf.mxu0 }
 0x172   : > { %v1567_v50 = vadd.f32 %v3353_v61, %v4609_v53 }
 0x173   : > { %v3355_v40 = vpop.f32.mrf.mxu1  ;;  %v4723_v4 = vpop.f32.mrf.mxu0 }
 0x174   : > { %v3356_v19 = vadd.f32 %v3355_v40, %v3354_v49  ;;  %v4725_v16 = vadd.f32 %v1727_v10, %v1567_v50 }
 0x175   : > { %v3357_v9 = vpop.f32.mrf.mxu1  ;;  %v4727_v20 = vpop.f32.mrf.mxu0 }
 0x176   : > { %v1570_v44 = vadd.f32 %v3356_v19, %v4613_v23 }
 0x177   : > { %v3358_v45 = vpop.f32.mrf.mxu1  ;;  %v4730_v26 = vpop.f32.mrf.mxu0 }
 0x178   : > { %v3359_v34 = vadd.f32 %v3358_v45, %v3357_v9  ;;  %v4732_v2 = vadd.f32 %v1730_v12, %v1570_v44 }
 0x179   : > { %v3360_v46 = vpop.f32.mrf.mxu1  ;;  %v4734_v54 = vpop.f32.mrf.mxu0 }
 0x17a   : > { %v1575_v53 = vadd.f32 %v3359_v34, %v4605_v18 }
 0x17b   : > { %v3361_v33 = vpop.f32.mrf.mxu1  ;;  %v4737_v21 = vpop.f32.mrf.mxu0 }
 0x17c   : > { %v3362_v10 = vadd.f32 %v3361_v33, %v3360_v46  ;;  %v4739_v6 = vadd.f32 %v3657_v22, %v1575_v53 }
 0x17d   : > { %v3363_v28 = vpop.f32.mrf.mxu1  ;;  %v4741_v35 = vpop.f32.mrf.mxu0 }
 0x17e   : > { %v1578_v23 = vadd.f32 %v3362_v10, %v4611_v32 }
 0x17f   : > { %v3364_v61 = vpop.f32.mrf.mxu1  ;;  %v4744_v49 = vpop.f32.mrf.mxu0 }
 0x180   : > { %v3365_v12 = vadd.f32 %v3364_v61, %v3363_v28  ;;  %v4746_v50 = vadd.f32 %v3658_v29, %v1578_v23 }
 0x181   : > { %v3366_v40 = vpop.f32.mrf.mxu1  ;;  %v4748_v19 = vpop.f32.mrf.mxu0 }
 0x182   : > { %v1583_v18 = vadd.f32 %v3365_v12, %v4619_v63 }
 0x183   : > { %v3367_v9 = vpop.f32.mrf.mxu1  ;;  %v4751_v44 = vpop.f32.mrf.mxu0 }
 0x184   : > { %v3368_v22 = vadd.f32 %v3367_v9, %v3366_v40  ;;  %v4753_v45 = vadd.f32 %v1743_v48, %v1583_v18 }
 0x185   : > { %v3369_v34 = vpop.f32.mrf.mxu1  ;;  %v4755_v46 = vpop.f32.mrf.mxu0 }
 0x186   : > { %5064 = vst [vmem:[#allocation2_spill] sm:$0xff] %v4755_v46  ;;  %v1586_v32 = vadd.f32 %v3368_v22, %v4626_v15 }
 0x187   : > { %v3370_v53 = vpop.f32.mrf.mxu1  ;;  %v4758_v33 = vpop.f32.mrf.mxu0 }
 0x188   : > { %v3371_v29 = vadd.f32 %v3370_v53, %v3369_v34  ;;  %v4760_v10 = vadd.f32 %v1746_v43, %v1586_v32 }
 0x189   : > { %v3372_v28 = vpop.f32.mrf.mxu1  ;;  %v4762_v23 = vpop.f32.mrf.mxu0 }
 0x18a   : > { %5065 = vst [vmem:[#allocation3_spill] sm:$0xff] %v4762_v23  ;;  %v1591_v63 = vadd.f32 %v3371_v29, %v4621_v36 }
 0x18b   : > { %v3373_v61 = vpop.f32.mrf.mxu1  ;;  %v4765_v12 = vpop.f32.mrf.mxu0 }
 0x18c   : > { %v3374_v48 = vadd.f32 %v3373_v61, %v3372_v28  ;;  %v4768_v40 = vadd.f32 %v4703_v60, %v1591_v63 }
 0x18d   : > { %v3375_v18 = vpop.f32.mrf.mxu1  ;;  %v3463_v15 = vpop.f32.mrf.mxu0 }
 0x18e   : > { %v1594_v9 = vadd.f32 %v3374_v48, %v4630_v47 }
 0x18f   : > { %v3376_v22 = vpop.f32.mrf.mxu1  ;;  %v3464_v34 = vpop.f32.mrf.mxu0 }
 0x190   : > { %v3377_v43 = vadd.f32 %v3376_v22, %v3375_v18  ;;  %v4771_v32 = vadd.f32 %v3464_v34, %v3463_v15  ;;  %v4774_v53 = vadd.f32 %v4708_v11, %v1594_v9 }
 0x191   : > { %v3378_v36 = vpop.f32.mrf.mxu1  ;;  %v4776_v29 = vpop.f32.mrf.mxu0 }
 0x192   : > { %v1599_v28 = vadd.f32 %v3377_v43, %v4636_v51 }
 0x193   : > { %v3379_v61 = vpop.f32.mrf.mxu1  ;;  %v4779_v60 = vpop.f32.mrf.mxu0 }
 0x194   : > { %v3380_v63 = vadd.f32 %v3379_v61, %v3378_v36  ;;  %v4782_v23 = vadd.f32 %v4716_v3, %v1599_v28 }
 0x195   : > { %v3381_v47 = vpop.f32.mrf.mxu1  ;;  %v4784_v48 = vpop.f32.mrf.mxu0 }
 0x196   : > { %v1602_v18 = vadd.f32 %v3380_v63, %v4641_v30 }
 0x197   : > { %v3382_v15 = vpop.f32.mrf.mxu1  ;;  %v4787_v11 = vpop.f32.mrf.mxu0 }
 0x198   : > { %v3383_v9 = vadd.f32 %v3382_v15, %v3381_v47  ;;  %v4790_v22 = vadd.f32 %v4723_v4, %v1602_v18 }
 0x199   : > { %v3384_v51 = vpop.f32.mrf.mxu1  ;;  %v4792_v34 = vpop.f32.mrf.mxu0 }
 0x19a   : > { %5066 = vst [vmem:[#allocation4_spill] sm:$0xff] %v4790_v22  ;;  %v1607_v43 = vadd.f32 %v3383_v9, %v4645_v13 }
 0x19b   : > { %v3385_v36 = vpop.f32.mrf.mxu1  ;;  %v4795_v3 = vpop.f32.mrf.mxu0 }
 0x19c   : > { %v3386_v28 = vadd.f32 %v3385_v36, %v3384_v51  ;;  %v4798_v61 = vadd.f32 %v4713_v52, %v1607_v43 }
 0x19d   : > { %v3387_v30 = vpop.f32.mrf.mxu1  ;;  %v4800_v63 = vpop.f32.mrf.mxu0 }
 0x19e   : > { %v1610_v47 = vadd.f32 %v3386_v28, %v4650_v62 }
 0x19f   : > { %v3388_v15 = vpop.f32.mrf.mxu1  ;;  %v4803_v4 = vpop.f32.mrf.mxu0 }
 0x1a0   : > { %v3389_v18 = vadd.f32 %v3388_v15, %v3387_v30  ;;  %v4806_v46 = vadd.f32 %v4720_v24, %v1610_v47 }
 0x1a1   : > { %v3390_v13 = vpop.f32.mrf.mxu1  ;;  %v4808_v9 = vpop.f32.mrf.mxu0 }
 0x1a2   : > { %5067 = vst [vmem:[#allocation5_spill] sm:$0xff] %v4806_v46  ;;  %v1615_v51 = vadd.f32 %v3389_v18, %v4660_v41 }
 0x1a3   : > { %v3391_v36 = vpop.f32.mrf.mxu1  ;;  %v4811_v52 = vpop.f32.mrf.mxu0 }
 0x1a4   : > { %v3392_v43 = vadd.f32 %v3391_v36, %v3390_v13  ;;  %v4814_v22 = vadd.f32 %v4730_v26, %v1615_v51 }
 0x1a5   : > { %v3393_v62 = vpop.f32.mrf.mxu1  ;;  %v4816_v28 = vpop.f32.mrf.mxu0 }
 0x1a6   : > { %5068 = vst [vmem:[#allocation6_spill] sm:$0xff] %v4814_v22  ;;  %v1618_v30 = vadd.f32 %v3392_v43, %v4670_v37 }
 0x1a7   : > { %v3394_v15 = vpop.f32.mrf.mxu1  ;;  %v4819_v24 = vpop.f32.mrf.mxu0 }
 0x1a8   : > { %v3395_v47 = vadd.f32 %v3394_v15, %v3393_v62  ;;  %v4822_v46 = vadd.f32 %v4737_v21, %v1618_v30 }
 0x1a9   : > { %v3396_v41 = vpop.f32.mrf.mxu1  ;;  %v4824_v18 = vpop.f32.mrf.mxu0 }
 0x1aa   : > { %5069 = vst [vmem:[#allocation7_spill] sm:$0xff] %v4822_v46  ;;  %v1623_v13 = vadd.f32 %v3395_v47, %v4678_v42 }
 0x1ab   : > { %v3397_v36 = vpop.f32.mrf.mxu1  ;;  %v4827_v26 = vpop.f32.mrf.mxu0 }
 0x1ac   : > { %v3398_v51 = vadd.f32 %v3397_v36, %v3396_v41  ;;  %v4830_v22 = vadd.f32 %v4727_v20, %v1623_v13 }
 0x1ad   : > { %v3399_v37 = vpop.f32.mrf.mxu1  ;;  %v4832_v43 = vpop.f32.mrf.mxu0 }
 0x1ae   : > { %5070 = vst [vmem:[#allocation8_spill] sm:$0xff] %v4830_v22  ;;  %v1626_v62 = vadd.f32 %v3398_v51, %v4686_v25 }
 0x1af   : > { %v3400_v15 = vpop.f32.mrf.mxu1  ;;  %v4835_v21 = vpop.f32.mrf.mxu0 }
 0x1b0   : > { %v3401_v30 = vadd.f32 %v3400_v15, %v3399_v37  ;;  %v4838_v46 = vadd.f32 %v4734_v54, %v1626_v62 }
 0x1b1   : > { %v3402_v42 = vpop.f32.mrf.mxu1  ;;  %v4840_v47 = vpop.f32.mrf.mxu0 }
 0x1b2   : > { %5071 = vst [vmem:[#allocation9_spill] sm:$0xff] %v4838_v46  ;;  %v1631_v41 = vadd.f32 %v3401_v30, %v4658_v38 }
 0x1b3   : > { %v3403_v36 = vpop.f32.mrf.mxu1  ;;  %v4843_v20 = vpop.f32.mrf.mxu0 }
 0x1b4   : > { %v3404_v13 = vadd.f32 %v3403_v36, %v3402_v42  ;;  %v4846_v22 = vadd.f32 %v4744_v49, %v1631_v41 }
 0x1b5   : > { %v3405_v25 = vpop.f32.mrf.mxu1  ;;  %v4848_v51 = vpop.f32.mrf.mxu0 }
 0x1b6   : > { %5072 = vst [vmem:[#allocation10_spill] sm:$0xff] %v4846_v22  ;;  %v1634_v37 = vadd.f32 %v3404_v13, %v4667_v8 }
 0x1b7   : > { %v3406_v15 = vpop.f32.mrf.mxu1  ;;  %v4851_v54 = vpop.f32.mrf.mxu0 }
 0x1b8   : > { %v3407_v62 = vadd.f32 %v3406_v15, %v3405_v25  ;;  %v4854_v46 = vadd.f32 %v4751_v44, %v1634_v37 }
 0x1b9   : > { %v3408_v38 = vpop.f32.mrf.mxu1  ;;  %v4856_v30 = vpop.f32.mrf.mxu0 }
 0x1ba   : > { %5073 = vst [vmem:[#allocation11_spill] sm:$0xff] %v4854_v46  ;;  %v1639_v42 = vadd.f32 %v3407_v62, %v4653_v27 }
 0x1bb   : > { %v3409_v36 = vpop.f32.mrf.mxu1  ;;  %v4859_v49 = vpop.f32.mrf.mxu0 }
 0x1bc   : > { %v3410_v41 = vadd.f32 %v3409_v36, %v3408_v38  ;;  %v4862_v22 = vadd.f32 %v4741_v35, %v1639_v42 }
 0x1bd   : > { %v3411_v8 = vpop.f32.mrf.mxu1  ;;  %v4864_v13 = vpop.f32.mrf.mxu0 }
 0x1be   : > { %5074 = vst [vmem:[#allocation12_spill] sm:$0xff] %v4862_v22  ;;  %v1642_v25 = vadd.f32 %v3410_v41, %v4663_v7 }
 0x1bf   : > { %v3412_v15 = vpop.f32.mrf.mxu1  ;;  %v4867_v44 = vpop.f32.mrf.mxu0 }
 0x1c0   : > { %v3413_v37 = vadd.f32 %v3412_v15, %v3411_v8  ;;  %v4870_v46 = vadd.f32 %v4748_v19, %v1642_v25 }
 0x1c1   : > { %v3414_v27 = vpop.f32.mrf.mxu1  ;;  %v4872_v62 = vpop.f32.mrf.mxu0 }
 0x1c2   : > { %5075 = vst [vmem:[#allocation13_spill] sm:$0xff] %v4870_v46  ;;  %v1647_v38 = vadd.f32 %v3413_v37, %v4676_v56 }
 0x1c3   : > { %v3415_v36 = vpop.f32.mrf.mxu1  ;;  %v4875_v35 = vpop.f32.mrf.mxu0 }
 0x1c4   : > { %v3416_v42 = vadd.f32 %v3415_v36, %v3414_v27  ;;  %v4878_v22 = vadd.f32 %v4758_v33, %v1647_v38 }
 0x1c5   : > { %v3417_v7 = vpop.f32.mrf.mxu1  ;;  %v4880_v41 = vpop.f32.mrf.mxu0 }
 0x1c6   : > { %5076 = vst [vmem:[#allocation14_spill] sm:$0xff] %v4878_v22  ;;  %v1650_v8 = vadd.f32 %v3416_v42, %v4684_v0  ;;  %v3471_v42 = vadd.f32 %v4787_v11, %v4784_v48 }
 0x1c7   : > { %v3418_v15 = vpop.f32.mrf.mxu1  ;;  %v4883_v19 = vpop.f32.mrf.mxu0 }
 0x1c8   : > { %v3419_v25 = vadd.f32 %v3418_v15, %v3417_v7  ;;  %v4886_v46 = vadd.f32 %v4765_v12, %v1650_v8 }
 0x1c9   : > { %v3420_v56 = vpop.f32.mrf.mxu1  ;;  %v4888_v37 = vpop.f32.mrf.mxu0 }
 0x1ca   : > { %5077 = vst [vmem:[#allocation15_spill] sm:$0xff] %v4886_v46  ;;  %v4891_v27 = vadd.f32 %v3419_v25, %v4673_v58  ;;  %v3474_v58 = vadd.f32 %v4795_v3, %v4792_v34 }
 0x1cb   : > { %v3421_v33 = vpop.f32.mrf.mxu1  ;;  %v4893_v38 = vpop.f32.mrf.mxu0 }
 0x1cc   : > { %v3422_v36 = vadd.f32 %v3421_v33, %v3420_v56  ;;  %v3468_v33 = vadd.f32 %v4779_v60, %v4776_v29 }
 0x1cd   : > { %v4895_v22 = vpop.f32.mrf.mxu0  ;;  %v3697_v0 = vpop.f32.mrf.mxu1 }
 0x1ce   : > { %v4900_v12 = vadd.f32 %v3422_v36, %v4681_v31  ;;  %v2219_v15 = vadd.f32 %v3697_v0, %v3471_v42 }
 0x1cf   : > { %v4902_v7 = vpop.f32.mrf.mxu0  ;;  %v2210_v8 = vpop.f32.mrf.mxu1 }
 0x1d0   : > { %5078 = vst [vmem:[#allocation16_spill] sm:$0xff] %v4900_v12  ;;  %v2211_v25 = vadd.f32 %v4771_v32, %v2210_v8  ;;  %v2339_v12 = vadd.f32 %v2219_v15, %v4695_v1  ;;  %v3477_v1 = vadd.f32 %v4803_v4, %v4800_v63 }
 0x1d1   : > { %v4907_v46 = vpop.f32.mrf.mxu0  ;;  %v3698_v56 = vpop.f32.mrf.mxu1 }
 0x1d2   : > { %v2337_v48 = vadd.f32 %v2211_v25, %v4689_v57  ;;  %v2222_v31 = vadd.f32 %v3698_v56, %v3474_v58  ;;  %v3483_v57 = vadd.f32 %v4819_v24, %v4816_v28 }
 0x1d3   : > { %v4913_v11 = vpop.f32.mrf.mxu0  ;;  %v2213_v36 = vpop.f32.mrf.mxu1 }
 0x1d4   : > { %v2340_v34 = vadd.f32 %v2222_v31, %v4698_v55  ;;  %v2214_v3 = vadd.f32 %v3468_v33, %v2213_v36  ;;  %v3486_v55 = vadd.f32 %v4827_v26, %v4824_v18  ;;  %v2567_v42 = vmul.f32 %v2337_v48, %v2337_v48 }
 0x1d5   : > { %v4922_v32 = vpop.f32.mrf.mxu0  ;;  %v3701_v29 = vpop.f32.mrf.mxu1  ;;  %v3480_v18 = vadd.f32 %v4811_v52, %v4808_v9 }
 0x1d6   : > { %v3088_v60 = vpack.c.bf16 %v2340_v34, %v2339_v12  ;;  %v2338_v0 = vadd.f32 %v2214_v3, %v4692_v39  ;;  %v2235_v33 = vadd.f32 %v3701_v29, %v3483_v57  ;;  %v2569_v39 = vmul.f32 %v2339_v12, %v2339_v12 }
 0x1d7   : > { %v4931_v8 = vpop.f32.mrf.mxu0  ;;  %v2226_v58 = vpop.f32.mrf.mxu1  ;;  %v2570_v26 = vmul.f32 %v2340_v34, %v2340_v34 }
 0x1d8   : > { %3160 = vst [vmem:[%s4920_s21 + $0x8] sm:$0xff] %v3088_v60   ;;  %v3083_v15 = vpack.c.bf16 %v2338_v0, %v2337_v48  ;;  %v2529_v25 = vadd.f32 %v2338_v0, %v2337_v48  ;;  %v2568_v56 = vmul.f32 %v2338_v0, %v2338_v0  ;;  %v2227_v28 = vadd.f32 %v3477_v1, %v2226_v58 }
 0x1d9   : > { %v4934_v24 = vpop.f32.mrf.mxu0  ;;  %v3702_v31 = vpop.f32.mrf.mxu1  ;;  %v2343_v29 = vadd.f32 %v2235_v33, %v4711_v14 }
 0x1da   : > { %3084 = vst [vmem:[%s4920_s21] sm:$0xff] %v3083_v15   ;;  %v2530_v36 = vadd.f32 %v2529_v25, %v2339_v12  ;;  %v2599_v63 = vadd.f32 %v2568_v56, %v2567_v42  ;;  %v2238_v4 = vadd.f32 %v3702_v31, %v3486_v55  ;;  %v2341_v3 = vadd.f32 %v2227_v28, %v4701_v17 }
 0x1db   : > { %v4940_v60 = vpop.f32.mrf.mxu0  ;;  %v2229_v48 = vpop.f32.mrf.mxu1  ;;  %v3489_v12 = vadd.f32 %v4835_v21, %v4832_v43  ;;  %v3495_v55 = vadd.f32 %v4851_v54, %v4848_v51  ;;  %v3498_v43 = vadd.f32 %v4859_v49, %v4856_v30 }
 0x1dc   : > { %v2600_v0 = vadd.f32 %v2599_v63, %v2569_v39  ;;  %v2531_v57 = vadd.f32 %v2530_v36, %v2340_v34  ;;  %v2344_v1 = vadd.f32 %v2238_v4, %v4718_v59  ;;  %v2230_v9 = vadd.f32 %v3480_v18, %v2229_v48 }
 0x1dd   : > { %v4948_v52 = vpop.f32.mrf.mxu0  ;;  %v3705_v17 = vpop.f32.mrf.mxu1  ;;  %v2571_v58 = vmul.f32 %v2341_v3, %v2341_v3  ;;  %v2573_v63 = vmul.f32 %v2343_v29, %v2343_v29 }
 0x1de   : > { %v2532_v42 = vadd.f32 %v2531_v57, %v2341_v3  ;;  %v2601_v15 = vadd.f32 %v2600_v0, %v2570_v26  ;;  %v3098_v25 = vpack.c.bf16 %v2344_v1, %v2343_v29  ;;  %v2342_v14 = vadd.f32 %v2230_v9, %v4706_v5 }
 0x1df   : > { %v4951_v34 = vpop.f32.mrf.mxu0  ;;  %v2242_v59 = vpop.f32.mrf.mxu1  ;;  %v2251_v51 = vadd.f32 %v3705_v17, %v3495_v55  ;;  %v3492_v5 = vadd.f32 %v4843_v20, %v4840_v47  ;;  %v2574_v57 = vmul.f32 %v2344_v1, %v2344_v1  ;;  %v3501_v17 = vadd.f32 %v4867_v44, %v4864_v13 }
 0x1e0   : > { %v2602_v21 = vadd.f32 %v2601_v15, %v2571_v58  ;;  %3162 = vst [vmem:[%s4920_s21 + $0x18] sm:$0xff] %v3098_v25   ;;  %v2243_v54 = vadd.f32 %v3489_v12, %v2242_v59  ;;  %v3093_v56 = vpack.c.bf16 %v2342_v14, %v2341_v3  ;;  %v2533_v33 = vadd.f32 %v2532_v42, %v2342_v14 }
 0x1e1   : > { %v2572_v28 = vmul.f32 %v2342_v14, %v2342_v14  ;;  %v4956_v31 = vpop.f32.mrf.mxu0  ;;  %v3706_v39 = vpop.f32.mrf.mxu1  ;;  %v2347_v3 = vadd.f32 %v2251_v51, %v4739_v6  ;;  %v3504_v44 = vadd.f32 %v4875_v35, %v4872_v62  ;;  %v3519_v35 = vadd.f32 %v4931_v8, %v4922_v32 }
 0x1e2   : > { %v2254_v36 = vadd.f32 %v3706_v39, %v3498_v43  ;;  %3161 = vst [vmem:[%s4920_s21 + $0x10] sm:$0xff] %v3093_v56   ;;  %v2534_v4 = vadd.f32 %v2533_v33, %v2343_v29  ;;  %v2345_v30 = vadd.f32 %v2243_v54, %v4725_v16  ;;  %v3507_v29 = vadd.f32 %v4883_v19, %v4880_v41 }
 0x1e3   : > { %v2603_v18 = vadd.f32 %v2602_v21, %v2572_v28  ;;  %v4962_v49 = vpop.f32.mrf.mxu0  ;;  %v2245_v26 = vpop.f32.mrf.mxu1  ;;  %v2577_v51 = vmul.f32 %v2347_v3, %v2347_v3 }
 0x1e4   : > { %v2348_v48 = vadd.f32 %v2254_v36, %v4746_v50  ;;  %v2246_v0 = vadd.f32 %v3492_v5, %v2245_v26  ;;  %v2535_v55 = vadd.f32 %v2534_v4, %v2344_v1  ;;  %v2575_v50 = vmul.f32 %v2345_v30, %v2345_v30 }
 0x1e5   : > { %v2604_v12 = vadd.f32 %v2603_v18, %v2573_v63  ;;  %v4966_v47 = vpop.f32.mrf.mxu0  ;;  %v3709_v20 = vpop.f32.mrf.mxu1  ;;  %v3510_v1 = vadd.f32 %v4893_v38, %v4888_v37  ;;  %v3513_v26 = vadd.f32 %v4902_v7, %v4895_v22  ;;  %v3516_v7 = vadd.f32 %v4913_v11, %v4907_v46 }
 0x1e6   : > { %v3108_v9 = vpack.c.bf16 %v2348_v48, %v2347_v3  ;;  %v2346_v16 = vadd.f32 %v2246_v0, %v4732_v2  ;;  %v2536_v6 = vadd.f32 %v2535_v55, %v2345_v30  ;;  %v2267_v41 = vadd.f32 %v3709_v20, %v3507_v29 }
 0x1e7   : > { %v2605_v42 = vadd.f32 %v2604_v12, %v2574_v57  ;;  %v4973_v58 = vpop.f32.mrf.mxu0  ;;  %v2258_v15 = vpop.f32.mrf.mxu1  ;;  %v2578_v36 = vmul.f32 %v2348_v48, %v2348_v48 }
 0x1e8   : > { %3164 = vst [vmem:[%s4920_s21 + $0x28] sm:$0xff] %v3108_v9   ;;  %v3103_v25 = vpack.c.bf16 %v2346_v16, %v2345_v30  ;;  %v2576_v14 = vmul.f32 %v2346_v16, %v2346_v16  ;;  %v2537_v59 = vadd.f32 %v2536_v6, %v2346_v16  ;;  %v2259_v2 = vadd.f32 %v3501_v17, %v2258_v15  ;;  %v5079_v15 = vld [vmem:[#allocation5_spill] sm:$0xff] }
 0x1e9   : > { %v2606_v19 = vadd.f32 %v2605_v42, %v2575_v50  ;;  %v4978_v43 = vpop.f32.mrf.mxu0  ;;  %v3710_v13 = vpop.f32.mrf.mxu1  ;;  %v2351_v28 = vadd.f32 %v2267_v41, %v4768_v40 }
 0x1ea   : > { %3163 = vst [vmem:[%s4920_s21 + $0x20] sm:$0xff] %v3103_v25   ;;  %v2270_v21 = vadd.f32 %v3710_v13, %v3510_v1  ;;  %v2538_v54 = vadd.f32 %v2537_v59, %v2347_v3  ;;  %v2349_v37 = vadd.f32 %v2259_v2, %v4753_v45  ;;  %v3531_v59 = vadd.f32 %v4973_v58, %v4966_v47  ;;  %v5080_v13 = vld [vmem:[#allocation4_spill] sm:$0xff] }
 0x1eb   : > { %v2607_v56 = vadd.f32 %v2606_v19, %v2576_v14  ;;  %v3533_v38 = vpop.f32.mrf.mxu0  ;;  %v2261_v33 = vpop.f32.mrf.mxu1  ;;  %v2581_v16 = vmul.f32 %v2351_v28, %v2351_v28 }
 0x1ec   : > { %v2352_v39 = vadd.f32 %v2270_v21, %v4774_v53  ;;  %v2262_v5 = vadd.f32 %v3504_v44, %v2261_v33  ;;  %v2539_v4 = vadd.f32 %v2538_v54, %v2348_v48  ;;  %v2579_v53 = vmul.f32 %v2349_v37, %v2349_v37 }
 0x1ed   : > { %v2608_v63 = vadd.f32 %v2607_v56, %v2577_v51  ;;  %v4986_v18 = vpop.f32.mrf.mxu0  ;;  %v3713_v62 = vpop.f32.mrf.mxu1  ;;  %v3522_v48 = vadd.f32 %v4940_v60, %v4934_v24  ;;  %v3525_v44 = vadd.f32 %v4951_v34, %v4948_v52  ;;  %v3528_v52 = vadd.f32 %v4962_v49, %v4956_v31 }
 0x1ee   : > { %v3118_v30 = vpack.c.bf16 %v2352_v39, %v2351_v28  ;;  %v2350_v45 = vadd.f32 %v2262_v5, %v4760_v10  ;;  %v2540_v40 = vadd.f32 %v2539_v4, %v2349_v37  ;;  %v2283_v32 = vadd.f32 %v3713_v62, %v3519_v35 }
 0x1ef   : > { %v2609_v3 = vadd.f32 %v2608_v63, %v2578_v36  ;;  %v4993_v0 = vpop.f32.mrf.mxu0  ;;  %v2274_v57 = vpop.f32.mrf.mxu1  ;;  %v2582_v14 = vmul.f32 %v2352_v39, %v2352_v39 }
 0x1f0   : > { %3166 = vst [vmem:[%s4920_s21 + $0x38] sm:$0xff] %v3118_v30   ;;  %v3113_v12 = vpack.c.bf16 %v2350_v45, %v2349_v37  ;;  %v2580_v55 = vmul.f32 %v2350_v45, %v2350_v45  ;;  %v2541_v20 = vadd.f32 %v2540_v40, %v2350_v45  ;;  %v2275_v10 = vadd.f32 %v3513_v26, %v2274_v57  ;;  %v5081_v30 = vld [vmem:[#allocation6_spill] sm:$0xff]  ;;  %v5082_v26 = vld [vmem:[#allocation8_spill] sm:$0xff] }
 0x1f1   : > { %v2610_v8 = vadd.f32 %v2609_v3, %v2579_v53  ;;  %v4998_v29 = vpop.f32.mrf.mxu0  ;;  %v3714_v22 = vpop.f32.mrf.mxu1  ;;  %v2355_v42 = vadd.f32 %v2283_v32, %v4798_v61  ;;  %v3534_v37 = vadd.f32 %v3533_v38, %v4978_v43  ;;  %v5083_v53 = vld [vmem:[#allocation9_spill] sm:$0xff] }
 0x1f2   : > { %3165 = vst [vmem:[%s4920_s21 + $0x30] sm:$0xff] %v3113_v12   ;;  %v2286_v9 = vadd.f32 %v3714_v22, %v3522_v48  ;;  %v2542_v17 = vadd.f32 %v2541_v20, %v2351_v28  ;;  %v2353_v24 = vadd.f32 %v2275_v10, %v4782_v23  ;;  %v5084_v20 = vld [vmem:[#allocation7_spill] sm:$0xff]  ;;  %v3537_v22 = vadd.f32 %v4993_v0, %v4986_v18 }
 0x1f3   : > { %v2611_v6 = vadd.f32 %v2610_v8, %v2580_v55  ;;  %v5004_v60 = vpop.f32.mrf.mxu0  ;;  %v2277_v50 = vpop.f32.mrf.mxu1  ;;  %v2585_v4 = vmul.f32 %v2355_v42, %v2355_v42 }
 0x1f4   : > { %v2356_v1 = vadd.f32 %v2286_v9, %v5079_v15  ;;  %v2278_v25 = vadd.f32 %v3516_v7, %v2277_v50  ;;  %v2543_v19 = vadd.f32 %v2542_v17, %v2352_v39  ;;  %v2583_v61 = vmul.f32 %v2353_v24, %v2353_v24 }
 0x1f5   : > { %v2612_v41 = vadd.f32 %v2611_v6, %v2581_v16  ;;  %v3541_v46 = vpop.f32.mrf.mxu0  ;;  %v3717_v11 = vpop.f32.mrf.mxu1 }
 0x1f6   : > { %v3128_v2 = vpack.c.bf16 %v2356_v1, %v2355_v42  ;;  %v2354_v23 = vadd.f32 %v2278_v25, %v5080_v13  ;;  %v2544_v21 = vadd.f32 %v2543_v19, %v2353_v24  ;;  %v2299_v39 = vadd.f32 %v3717_v11, %v3531_v59 }
 0x1f7   : > { %v2613_v51 = vadd.f32 %v2612_v41, %v2582_v14  ;;  %v3542_v54 = vpop.f32.mrf.mxu0  ;;  %v2290_v56 = vpop.f32.mrf.mxu1  ;;  %v2586_v48 = vmul.f32 %v2356_v1, %v2356_v1 }
 0x1f8   : > { %3168 = vst [vmem:[%s4920_s21 + $0x48] sm:$0xff] %v3128_v2   ;;  %v3123_v33 = vpack.c.bf16 %v2354_v23, %v2353_v24  ;;  %v2584_v28 = vmul.f32 %v2354_v23, %v2354_v23  ;;  %v2545_v47 = vadd.f32 %v2544_v21, %v2354_v23  ;;  %v2291_v58 = vadd.f32 %v3525_v44, %v2290_v56  ;;  %v5085_v2 = vld [vmem:[#allocation10_spill] sm:$0xff]  ;;  %v5086_v21 = vld [vmem:[#allocation12_spill] sm:$0xff] }
 0x1f9   : > { %v2614_v5 = vadd.f32 %v2613_v51, %v2583_v61  ;;  %v3544_v36 = vpop.f32.mrf.mxu0  ;;  %v3718_v63 = vpop.f32.mrf.mxu1  ;;  %v2359_v40 = vadd.f32 %v2299_v39, %v5082_v26  ;;  %v3543_v49 = vadd.f32 %v3542_v54, %v3541_v46  ;;  %v3540_v46 = vadd.f32 %v5004_v60, %v4998_v29  ;;  %v5087_v51 = vld [vmem:[#allocation13_spill] sm:$0xff] }
 0x1fa   : > { %3167 = vst [vmem:[%s4920_s21 + $0x40] sm:$0xff] %v3123_v33   ;;  %v2302_v34 = vadd.f32 %v3718_v63, %v3534_v37  ;;  %v2546_v62 = vadd.f32 %v2545_v47, %v2355_v42  ;;  %v2357_v45 = vadd.f32 %v2291_v58, %v5081_v30  ;;  %v5088_v47 = vld [vmem:[#allocation11_spill] sm:$0xff] }
 0x1fb   : > { %v2615_v35 = vadd.f32 %v2614_v5, %v2584_v28  ;;  %v3545_v43 = vpop.f32.mrf.mxu0  ;;  %v2293_v38 = vpop.f32.mrf.mxu1  ;;  %v2589_v0 = vmul.f32 %v2359_v40, %v2359_v40 }
 0x1fc   : > { %v2360_v3 = vadd.f32 %v2302_v34, %v5083_v53  ;;  %v2294_v57 = vadd.f32 %v3528_v52, %v2293_v38  ;;  %v2547_v55 = vadd.f32 %v2546_v62, %v2356_v1  ;;  %v2587_v9 = vmul.f32 %v2357_v45, %v2357_v45 }
 0x1fd   : > { %v2616_v12 = vadd.f32 %v2615_v35, %v2585_v4  ;;  %v3547_v32 = vpop.f32.mrf.mxu0  ;;  %v3721_v31 = vpop.f32.mrf.mxu1  ;;  %v3546_v24 = vadd.f32 %v3545_v43, %v3544_v36 }
 0x1fe   : > { %v3138_v8 = vpack.c.bf16 %v2360_v3, %v2359_v40  ;;  %v2358_v10 = vadd.f32 %v2294_v57, %v5084_v20  ;;  %v2548_v7 = vadd.f32 %v2547_v55, %v2357_v45  ;;  %v2315_v15 = vadd.f32 %v3721_v31, %v3543_v49  ;;  %v5089_v55 = vld [vmem:[#allocation14_spill] sm:$0xff] }
 0x1ff   : > { %v2617_v16 = vadd.f32 %v2616_v12, %v2586_v48  ;;  %v3548_v17 = vpop.f32.mrf.mxu0  ;;  %v2306_v6 = vpop.f32.mrf.mxu1  ;;  %v2590_v37 = vmul.f32 %v2360_v3, %v2360_v3 }
 0x200   : > { %3170 = vst [vmem:[%s4920_s21 + $0x58] sm:$0xff] %v3138_v8   ;;  %v3133_v50 = vpack.c.bf16 %v2358_v10, %v2357_v45  ;;  %v2588_v42 = vmul.f32 %v2358_v10, %v2358_v10  ;;  %v2549_v25 = vadd.f32 %v2548_v7, %v2358_v10  ;;  %v2307_v14 = vadd.f32 %v3537_v22, %v2306_v6  ;;  %v5090_v10 = vld [vmem:[#allocation2_spill] sm:$0xff]  ;;  %v5092_v6 = vld [vmem:[#allocation3_spill] sm:$0xff] }
 0x201   : > { %v2618_v1 = vadd.f32 %v2617_v16, %v2587_v9  ;;  %v3550_v41 = vpop.f32.mrf.mxu0  ;;  %v3722_v19 = vpop.f32.mrf.mxu1  ;;  %v2363_v61 = vadd.f32 %v2315_v15, %v5086_v21  ;;  %v3549_v60 = vadd.f32 %v3548_v17, %v3547_v32  ;;  %v1816_v22 = vadd.f32 %v5090_v10, %v4891_v27  ;;  %v5091_v17 = vld [vmem:[#allocation16_spill] sm:$0xff] }
 0x202   : > { %3169 = vst [vmem:[%s4920_s21 + $0x50] sm:$0xff] %v3133_v50   ;;  %v2318_v18 = vadd.f32 %v3722_v19, %v3546_v24  ;;  %v2550_v11 = vadd.f32 %v2549_v25, %v2359_v40  ;;  %v2361_v13 = vadd.f32 %v2307_v14, %v5085_v2  ;;  %v1819_v24 = vadd.f32 %v5092_v6, %v5091_v17 }
 0x203   : > { %v2619_v59 = vadd.f32 %v2618_v1, %v2588_v42  ;;  %v3551_v23 = vpop.f32.mrf.mxu0  ;;  %v2309_v44 = vpop.f32.mrf.mxu1  ;;  %v2593_v53 = vmul.f32 %v2363_v61, %v2363_v61  ;;  %v5093_v42 = vld [vmem:[#allocation15_spill] sm:$0xff] }
 0x204   : > { %v2364_v54 = vadd.f32 %v2318_v18, %v5087_v51  ;;  %v2310_v56 = vadd.f32 %v3540_v46, %v2309_v44  ;;  %v2551_v28 = vadd.f32 %v2550_v11, %v2360_v3  ;;  %v2591_v63 = vmul.f32 %v2361_v13, %v2361_v13 }
 0x205   : > { %v2620_v33 = vadd.f32 %v2619_v59, %v2589_v0  ;;  %v3553_v39 = vpop.f32.mrf.mxu0  ;;  %v3725_v29 = vpop.f32.mrf.mxu1  ;;  %v3552_v3 = vadd.f32 %v3551_v23, %v3550_v41 }
 0x206   : > { %v3148_v5 = vpack.c.bf16 %v2364_v54, %v2363_v61  ;;  %v2362_v58 = vadd.f32 %v2310_v56, %v5088_v47  ;;  %v2552_v36 = vadd.f32 %v2551_v28, %v2361_v13  ;;  %v2594_v7 = vmul.f32 %v2364_v54, %v2364_v54 }
 0x207   : > { %v2621_v52 = vadd.f32 %v2620_v33, %v2590_v37  ;;  %v3554_v34 = vpop.f32.mrf.mxu0  ;;  %v2322_v4 = vpop.f32.mrf.mxu1 }
 0x208   : > { %3172 = vst [vmem:[%s4920_s21 + $0x68] sm:$0xff] %v3148_v5   ;;  %v3143_v62 = vpack.c.bf16 %v2362_v58, %v2361_v13  ;;  %v2592_v35 = vmul.f32 %v2362_v58, %v2362_v58  ;;  %v3555_v30 = vadd.f32 %v3554_v34, %v3553_v39  ;;  %v2323_v45 = vadd.f32 %v3549_v60, %v2322_v4 }
 0x209   : > { %v2622_v43 = vadd.f32 %v2621_v52, %v2591_v63  ;;  %v2553_v38 = vadd.f32 %v2552_v36, %v2362_v58  ;;  %v3556_v26 = vpop.f32.mrf.mxu0  ;;  %v3726_v40 = vpop.f32.mrf.mxu1 }
 0x20a   : > { %3171 = vst [vmem:[%s4920_s21 + $0x60] sm:$0xff] %v3143_v62   ;;  %v2331_v12 = vadd.f32 %v3725_v29, %v3555_v30  ;;  %v2365_v32 = vadd.f32 %v2323_v45, %v5089_v55 }
 0x20b   : > { %v2554_v57 = vadd.f32 %v2553_v38, %v2363_v61  ;;  %v2623_v48 = vadd.f32 %v2622_v43, %v2592_v35  ;;  %v3557_v31 = vpop.f32.mrf.mxu0  ;;  %v2325_v49 = vpop.f32.mrf.mxu1 }
 0x20c   : > { %v3558_v8 = vadd.f32 %v3557_v31, %v3556_v26  ;;  %v2326_v20 = vadd.f32 %v3552_v3, %v2325_v49  ;;  %v2367_v1 = vadd.f32 %v2331_v12, %v1816_v22  ;;  %v2595_v14 = vmul.f32 %v2365_v32, %v2365_v32 }
 0x20d   : > { %v2624_v9 = vadd.f32 %v2623_v48, %v2593_v53  ;;  %v2555_v16 = vadd.f32 %v2554_v57, %v2364_v54 }
 0x20e   : > { %v2334_v50 = vadd.f32 %v3726_v40, %v3558_v8  ;;  %v2366_v15 = vadd.f32 %v2326_v20, %v5093_v42  ;;  %v2597_v59 = vmul.f32 %v2367_v1, %v2367_v1 }
 0x20f   : > { %v2556_v25 = vadd.f32 %v2555_v16, %v2365_v32  ;;  %v2625_v41 = vadd.f32 %v2624_v9, %v2594_v7 }
 0x210   : > { %v2368_v19 = vadd.f32 %v2334_v50, %v1819_v24  ;;  %v3153_v46 = vpack.c.bf16 %v2366_v15, %v2365_v32  ;;  %v2596_v18 = vmul.f32 %v2366_v15, %v2366_v15 }
 0x211   : > { %v2626_v0 = vadd.f32 %v2625_v41, %v2595_v14  ;;  %v2557_v27 = vadd.f32 %v2556_v25, %v2366_v15 }
 0x212   : > { %v3158_v11 = vpack.c.bf16 %v2368_v19, %v2367_v1  ;;  %3173 = vst [vmem:[%s4920_s21 + $0x70] sm:$0xff] %v3153_v46   ;;  %v2598_v23 = vmul.f32 %v2368_v19, %v2368_v19 }
 0x213   : > { %v2558_v2 = vadd.f32 %v2557_v27, %v2367_v1  ;;  %v2627_v13 = vadd.f32 %v2626_v0, %v2596_v18 }
 0x214   : > { %3174 = vst [vmem:[%s4920_s21 + $0x78] sm:$0xff] %v3158_v11  }
 0x215   : > { %v2559_v44 = vadd.f32 %v2558_v2, %v2368_v19  ;;  %v2628_v21 = vadd.f32 %v2627_v13, %v2597_v59 }
 0x217   : > { %v2560_v61 = vrot.slane %v2559_v44, 4  ;;  %v2629_v51 = vadd.f32 %v2628_v21, %v2598_v23 }
 0x219   : > { %v2561_v54 = vadd.f32 %v2560_v61, %v2559_v44  ;;  %v2630_v56 = vrot.slane %v2629_v51, 4 }
 0x21b   : > { %v2562_v37 = vrot.slane %v2561_v54, 2  ;;  %v2631_v33 = vadd.f32 %v2630_v56, %v2629_v51 }
 0x21d   : > { %v2563_v28 = vadd.f32 %v2562_v37, %v2561_v54  ;;  %v2632_v39 = vrot.slane %v2631_v33, 2 }
 0x21f   : > { %v2564_v29 = vrot.slane %v2563_v28, 1  ;;  %v2633_v60 = vadd.f32 %v2632_v39, %v2631_v33 }
 0x221   : > { %v2565_v5 = vadd.f32 %v2564_v29, %v2563_v28  ;;  %v2634_v47 = vrot.slane %v2633_v60, 1 }
 0x223   : > { %2566 = vst [vmem:[%s261_s24] sm:$0x1] %v2565_v5  ;;  %v2635_v58 = vadd.f32 %v2634_v47, %v2633_v60 }
 0x225   : > { %2636 = vst [vmem:[%s267_s27] sm:$0x1] %v2635_v58 }
 0x226 PF: > { %s15_s17 = sadd.s32 1, %s3905_s17   ;;  %s5094_s15 = smov %s3901_s16 }
 0x227   : > { %p12_p5 = scmp.ge.s32.totalorder %s15_s17, 4   ;;  %s5095_s16 = smov %s5097_s18 }
 0x229   :  { %14 = sbr.rel (!%p12_p5) target bundleno = 2 (0x2), region = 87 }

</bundles_post_ra>
